<compile_context>
chip_gen: v5e
topology: v5e:2x2
jax: 0.10.0
libtpu: 0.0.40
codegen_flags: <defaults>
</compile_context>

<pallas_src>
import jax
import jax.numpy as jnp
import numpy as np
from jax.experimental import pallas as pl
from jax.experimental.pallas import tpu as pltpu


def _make_mhsa_kernel(n_head, d_k, d_v, eps, with_attn, kv_fused,
                      block_k, n_kv_blocks):
    """Builds the kernel body; all flags are static."""
    d_qk = n_head * d_k
    d_vv = n_head * d_v
    scale = 1.0 / (d_k ** 0.5)

    def kernel(*refs):
        if kv_fused:
            (xq_ref, xkv_ref, wq_ref, wkv_ref,
             wfc_ref, gamma_ref, beta_ref) = refs[:7]
            rest = refs[7:]
        else:
            (xq_ref, xk_ref, xv_ref, wq_ref, wk_ref, wv_ref,
             wfc_ref, gamma_ref, beta_ref) = refs[:9]
            rest = refs[9:]
        if with_attn:
            out_ref, attn_ref, k_cache, v_cache = rest
        else:
            out_ref, k_cache, v_cache = rest

        # ---- Project K/V once per batch element (first query tile only). ----
        # The projections stay resident in VMEM scratch across all query tiles
        # of this batch element (qi grid axis is "arbitrary").
        @pl.when(pl.program_id(1) == 0)
        def _():
            if kv_fused:
                kv = jnp.dot(xkv_ref[0], wkv_ref[...],
                             preferred_element_type=jnp.float32)
                k_cache[...] = kv[:, :d_qk].astype(k_cache.dtype)
                v_cache[...] = kv[:, d_qk:].astype(v_cache.dtype)
            else:
                k_cache[...] = jnp.dot(
                    xk_ref[0], wk_ref[...],
                    preferred_element_type=jnp.float32).astype(k_cache.dtype)
                v_cache[...] = jnp.dot(
                    xv_ref[0], wv_ref[...],
                    preferred_element_type=jnp.float32).astype(v_cache.dtype)

        xq = xq_ref[0]                     # (TQ, d_model) query tile
        cdt = xq.dtype                     # matmul compute dtype (fp32 or bf16)
        tq = xq.shape[0]
        lk = k_cache.shape[0]

        # ---- Q projection (per tile), 1/sqrt(d_k) applied once. ----
        q = jnp.dot(xq, wq_ref[...], preferred_element_type=jnp.float32)
        # NOTE: splitting the lane dim (H*d_k -> H, d_k) can relayout when
        # d_k < 128; verify with pl.lower_as_mlir for production shapes.
        q3 = (q * scale).astype(cdt).reshape(tq, n_head, d_k)

        if with_attn:
            # Materialized path: the (H, TQ, Lk) slab is required because the
            # module returns the attention probabilities.
            k3 = k_cache[...].reshape(lk, n_head, d_k)
            v3 = v_cache[...].reshape(lk, n_head, d_v)
            s = jnp.einsum('qhd,khd->hqk', q3, k3,
                           preferred_element_type=jnp.float32)
            s = s - jnp.max(s, axis=-1, keepdims=True)
            e = jnp.exp(s)
            denom = jnp.sum(e, axis=-1, keepdims=True)
            # EUP reciprocal: rows sum to 1 only to ~1e-3; fine for inference.
            attn = e * pl.reciprocal(denom, approx=True)
            attn_ref[0] = attn.astype(attn_ref.dtype)
            ctx = jnp.einsum('hqk,khd->qhd', attn.astype(cdt), v3,
                             preferred_element_type=jnp.float32)
            ctx = ctx.reshape(tq, d_vv).astype(cdt)
        else:
            # Flash-style KV-tiled online softmax: running max / denom / acc,
            # live state independent of Lk.
            def body(kb, carry):
                m_i, l_i, acc = carry
                start = pl.multiple_of(kb * block_k, block_k)
                k3 = k_cache[pl.ds(start, block_k), :].reshape(
                    block_k, n_head, d_k)
                v3 = v_cache[pl.ds(start, block_k), :].reshape(
                    block_k, n_head, d_v)
                s = jnp.einsum('qhd,khd->hqk', q3, k3,
                               preferred_element_type=jnp.float32)
                m_new = jnp.maximum(m_i, jnp.max(s, axis=-1, keepdims=True))
                alpha = jnp.exp(m_i - m_new)
                p = jnp.exp(s - m_new)
                l_new = alpha * l_i + jnp.sum(p, axis=-1, keepdims=True)
                pv = jnp.einsum('hqk,khd->hqd', p.astype(cdt), v3,
                                preferred_element_type=jnp.float32)
                return m_new, l_new, alpha * acc + pv

            m0 = jnp.full((n_head, tq, 1), -jnp.inf, jnp.float32)
            l0 = jnp.zeros((n_head, tq, 1), jnp.float32)
            acc0 = jnp.zeros((n_head, tq, d_v), jnp.float32)
            _, l_i, acc = jax.lax.fori_loop(0, n_kv_blocks, body,
                                            (m0, l0, acc0))
            ctx = acc * pl.reciprocal(l_i, approx=True)       # (H, TQ, d_v)
            ctx = jnp.transpose(ctx, (1, 0, 2)).reshape(tq, d_vv).astype(cdt)

        # ---- Output projection + residual + LayerNorm (fp32). ----
        out = jnp.dot(ctx, wfc_ref[...], preferred_element_type=jnp.float32)
        out = out + xq.astype(jnp.float32)                    # residual = q input
        mean = jnp.mean(out, axis=-1, keepdims=True)
        var = jnp.mean((out - mean) ** 2, axis=-1, keepdims=True)
        norm = (out - mean) * jax.lax.rsqrt(var + eps)
        out_ref[0] = (norm * gamma_ref[...] + beta_ref[...]).astype(out_ref.dtype)

    return kernel


_BUFFERED_WEIGHTS_OK = True  # flipped off once if pipeline_mode=Buffered(1) is rejected


def multi_head_self_attention(q, k, v, params, *, n_head, d_k, d_v, eps=1e-6,
                              block_q=None, block_k=None, return_attn=True,
                              attn_dtype=jnp.bfloat16):
    """q, k, v: (B, L, d_model). Returns (out, attn) or out if return_attn=False.

    TODO(synk): mask (masked_fill) and the two Dropout layers of the PyTorch
    module are omitted (eval-mode, mask=None semantics only).
    """
    global _BUFFERED_WEIGHTS_OK
    B, Lq, d_model = q.shape
    Lk, Lv = k.shape[1], v.shape[1]
    assert Lk == Lv, "key/value sequence lengths must match"
    wq, wk, wv, wfc, gamma, beta = params

    # Self-attention (q=k=v object-wise): dedupe the KV activation DMA and fuse
    # the K/V projection weights into one matmul.
    kv_fused = k is v

    # --- VMEM budget & tile heuristics derived from the actual part. ---
    try:
        vmem_cap = int(pltpu.get_tpu_info().vmem_capacity_bytes)
    except Exception:
        vmem_cap = 128 * 1024 * 1024
    vmem_limit = int(min(vmem_cap - 16 * 2 ** 20, vmem_cap * 3 // 4))

    if block_q is None:
        big_vmem = vmem_cap >= 96 * 2 ** 20
        prefs = (512, 256, 128) if big_vmem else (128, 256)   # multiples of 128
        block_q = next((c for c in prefs if Lq % c == 0), None)
        if block_q is None:
            if Lq <= 512:
                block_q = Lq
            else:
                block_q = next((c for c in (64, 32, 16) if Lq % c == 0), Lq)
    assert Lq % block_q == 0
    n_q = Lq // block_q

    if block_k is None:
        block_k = next((c for c in (512, 256, 128) if Lk % c == 0), Lk)
    block_k = min(block_k, Lk)
    if Lk % block_k != 0:
        block_k = Lk
    n_kv = Lk // block_k

    gamma2 = gamma.reshape(1, d_model)
    beta2 = beta.reshape(1, d_model)
    if kv_fused:
        wkv = jnp.concatenate([wk, wv], axis=1)   # (d_model, H*(d_k+d_v))

    # Advisory cost estimate (K/V projection counted once per batch element).
    itemsize = q.dtype.itemsize
    flops = (2 * B * Lq * d_model * n_head * d_k
             + 2 * B * Lk * d_model * n_head * (d_k + d_v)
             + 2 * B * n_head * Lq * Lk * (d_k + d_v)
             + 2 * B * Lq * n_head * d_v * d_model)
    bytes_accessed = (B * Lq * d_model * itemsize
                      + B * Lk * d_model * itemsize * (1 if kv_fused else 2)
                      + (wq.size + wk.size + wv.size + wfc.size
                         + 2 * d_model) * itemsize
                      + B * Lq * d_model * itemsize
                      + (B * n_head * Lq * Lk * jnp.dtype(attn_dtype).itemsize
                         if return_attn else 0))
    cost = pl.CostEstimate(flops=int(flops),
                           transcendentals=int(B * n_head * Lq * Lk),
                           bytes_accessed=int(bytes_accessed))

    def _run(weights_buffered):
        wmode = (dict(pipeline_mode=pl.Buffered(1))
                 if weights_buffered else {})   # single-buffer invariant inputs

        q_spec = pl.BlockSpec((1, block_q, d_model), lambda b, qi: (b, qi, 0))
        if kv_fused:
            in_specs = [
                q_spec,
                pl.BlockSpec((1, Lk, d_model), lambda b, qi: (b, 0, 0)),     # x_kv
                pl.BlockSpec((d_model, n_head * d_k),
                             lambda b, qi: (0, 0), **wmode),                 # W_q
                pl.BlockSpec((d_model, n_head * (d_k + d_v)),
                             lambda b, qi: (0, 0), **wmode),                 # W_k|W_v
                pl.BlockSpec((n_head * d_v, d_model),
                             lambda b, qi: (0, 0), **wmode),                 # W_fc
                pl.BlockSpec((1, d_model), lambda b, qi: (0, 0), **wmode),   # gamma
                pl.BlockSpec((1, d_model), lambda b, qi: (0, 0), **wmode),   # beta
            ]
            args = (q, k, wq, wkv, wfc, gamma2, beta2)
        else:
            in_specs = [
                q_spec,
                pl.BlockSpec((1, Lk, d_model), lambda b, qi: (b, 0, 0)),     # x_k
                pl.BlockSpec((1, Lv, d_model), lambda b, qi: (b, 0, 0)),     # x_v
                pl.BlockSpec((d_model, n_head * d_k),
                             lambda b, qi: (0, 0), **wmode),                 # W_q
                pl.BlockSpec((d_model, n_head * d_k),
                             lambda b, qi: (0, 0), **wmode),                 # W_k
                pl.BlockSpec((d_model, n_head * d_v),
                             lambda b, qi: (0, 0), **wmode),                 # W_v
                pl.BlockSpec((n_head * d_v, d_model),
                             lambda b, qi: (0, 0), **wmode),                 # W_fc
                pl.BlockSpec((1, d_model), lambda b, qi: (0, 0), **wmode),   # gamma
                pl.BlockSpec((1, d_model), lambda b, qi: (0, 0), **wmode),   # beta
            ]
            args = (q, k, v, wq, wk, wv, wfc, gamma2, beta2)

        out_spec = pl.BlockSpec((1, block_q, d_model), lambda b, qi: (b, qi, 0))
        if return_attn:
            out_shape = (jax.ShapeDtypeStruct((B, Lq, d_model), q.dtype),
                         jax.ShapeDtypeStruct((B, n_head, Lq, Lk), attn_dtype))
            out_specs = (out_spec,
                         pl.BlockSpec((1, n_head, block_q, Lk),
                                      lambda b, qi: (b, 0, qi, 0)))
        else:
            out_shape = jax.ShapeDtypeStruct((B, Lq, d_model), q.dtype)
            out_specs = out_spec

        kernel = _make_mhsa_kernel(n_head, d_k, d_v, eps, return_attn,
                                   kv_fused, block_k, n_kv)

        call = pl.pallas_call(
            kernel,
            out_shape=out_shape,
            grid_spec=pltpu.PrefetchScalarGridSpec(
                num_scalar_prefetch=0,
                grid=(B, n_q),
                in_specs=in_specs,
                out_specs=out_specs,
                scratch_shapes=[pltpu.VMEM((Lk, n_head * d_k), q.dtype),
                                pltpu.VMEM((Lk, n_head * d_v), q.dtype)]),
            compiler_params=pltpu.CompilerParams(
                # qi must be "arbitrary": the K/V scratch cache is filled at
                # qi==0 and reused by later qi steps of the same batch element.
                # TODO(synk): on v7x with B==1 this leaves one TensorCore idle;
                # precompute K/V outside the kernel in that configuration.
                dimension_semantics=("parallel", "arbitrary"),
                vmem_limit_bytes=vmem_limit),
            cost_estimate=cost,
        )
        return call(*args)

    if _BUFFERED_WEIGHTS_OK:
        try:
            return _run(weights_buffered=True)
        except Exception:
            _BUFFERED_WEIGHTS_OK = False   # Buffered(1) unsupported; retry plain
    return _run(weights_buffered=False)


def reference_mhsa(q, k, v, params, *, n_head, d_k, d_v, eps=1e-6):
    """Pure-JAX reference matching the PyTorch forward (eval mode, no mask)."""
    wq, wk, wv, wfc, gamma, beta = params
    B, Lq, d_model = q.shape
    Lk, Lv = k.shape[1], v.shape[1]
    residual = q
    qp = (q @ wq).reshape(B, Lq, n_head, d_k).transpose(0, 2, 1, 3)
    kp = (k @ wk).reshape(B, Lk, n_head, d_k).transpose(0, 2, 1, 3)
    vp = (v @ wv).reshape(B, Lv, n_head, d_v).transpose(0, 2, 1, 3)
    scores = jnp.einsum("bhqd,bhkd->bhqk", qp / (d_k ** 0.5), kp)
    attn = jax.nn.softmax(scores, axis=-1)
    ctx = jnp.einsum("bhqk,bhkd->bhqd", attn, vp)
    ctx = ctx.transpose(0, 2, 1, 3).reshape(B, Lq, n_head * d_v)
    out = ctx @ wfc + residual
    mean = jnp.mean(out, axis=-1, keepdims=True)
    var = jnp.mean((out - mean) ** 2, axis=-1, keepdims=True)
    out = (out - mean) * jax.lax.rsqrt(var + eps) * gamma + beta
    return out, attn


def _make_params(key, d_model, n_head, d_k, d_v):
    k0, k1, k2, k3 = jax.random.split(key, 4)
    wq = jax.random.normal(k0, (d_model, n_head * d_k), jnp.float32) * 0.1
    wk = jax.random.normal(k1, (d_model, n_head * d_k), jnp.float32) * 0.1
    wv = jax.random.normal(k2, (d_model, n_head * d_v), jnp.float32) * 0.1
    wfc = jax.random.normal(k3, (n_head * d_v, d_model), jnp.float32) * 0.1
    gamma = jnp.ones((d_model,), jnp.float32)
    beta = jnp.zeros((d_model,), jnp.float32)
    return (wq, wk, wv, wfc, gamma, beta)


if __name__ == "__main__":
    key = jax.random.PRNGKey(0)
    kp, kx = jax.random.split(key)

    # --- Test 1: module-consistent tiny shapes, self-attention (q = k = v). ---
    B, L, d_model = 2, 8, 32
    n_head, d_k, d_v = 4, 8, 8
    params = _make_params(kp, d_model, n_head, d_k, d_v)
    x = jax.random.normal(kx, (B, L, d_model), jnp.float32)

    out, attn = multi_head_self_attention(
        x, x, x, params, n_head=n_head, d_k=d_k, d_v=d_v, return_attn=True)
    jax.block_until_ready((out, attn))
    ref_out, ref_attn = reference_mhsa(x, x, x, params,
                                       n_head=n_head, d_k=d_k, d_v=d_v)
    assert np.allclose(np.asarray(out), np.asarray(ref_out),
                       atol=5e-3, rtol=5e-3), "out mismatch (attn path)"
    assert np.allclose(np.asarray(attn.astype(jnp.float32)), np.asarray(ref_attn),
                       atol=1e-2, rtol=5e-2), "attn mismatch"

    out_na = multi_head_self_attention(
        x, x, x, params, n_head=n_head, d_k=d_k, d_v=d_v, return_attn=False)
    jax.block_until_ready(out_na)
    assert np.allclose(np.asarray(out_na), np.asarray(ref_out),
                       atol=5e-3, rtol=5e-3), "out mismatch (flash path)"

    # --- Test 2: multiple query tiles + multiple KV blocks (scratch K/V cache
    # reused across qi steps, online-softmax loop over 2 KV tiles). ---
    B2, L2, dm2 = 2, 256, 64
    nh2, dk2, dv2 = 4, 16, 16
    kp2, kx2 = jax.random.split(kp)
    params2 = _make_params(kp2, dm2, nh2, dk2, dv2)
    x2 = jax.random.normal(kx2, (B2, L2, dm2), jnp.float32)

    out2, attn2 = multi_head_self_attention(
        x2, x2, x2, params2, n_head=nh2, d_k=dk2, d_v=dv2,
        block_q=64, return_attn=True)
    out3 = multi_head_self_attention(
        x2, x2, x2, params2, n_head=nh2, d_k=dk2, d_v=dv2,
        block_q=64, block_k=128, return_attn=False)
    jax.block_until_ready((out2, attn2, out3))
    ref_out2, ref_attn2 = reference_mhsa(x2, x2, x2, params2,
                                         n_head=nh2, d_k=dk2, d_v=dv2)
    assert np.allclose(np.asarray(out2), np.asarray(ref_out2),
                       atol=5e-3, rtol=5e-3), "out mismatch (tiled attn path)"
    assert np.allclose(np.asarray(attn2.astype(jnp.float32)), np.asarray(ref_attn2),
                       atol=1e-2, rtol=5e-2), "attn mismatch (tiled)"
    assert np.allclose(np.asarray(out3), np.asarray(ref_out2),
                       atol=5e-3, rtol=5e-3), "out mismatch (tiled flash path)"

    # --- Test 3: distinct q/k/v (non-fused K/V branch of the kernel). ---
    kq3, kk3, kv3 = jax.random.split(kx2, 3)
    q_in = jax.random.normal(kq3, (B, L, d_model), jnp.float32)
    k_in = jax.random.normal(kk3, (B, L, d_model), jnp.float32)
    v_in = jax.random.normal(kv3, (B, L, d_model), jnp.float32)
    out4, attn4 = multi_head_self_attention(
        q_in, k_in, v_in, params, n_head=n_head, d_k=d_k, d_v=d_v,
        return_attn=True)
    jax.block_until_ready((out4, attn4))
    ref_out3, ref_attn3 = reference_mhsa(q_in, k_in, v_in, params,
                                         n_head=n_head, d_k=d_k, d_v=d_v)
    assert np.allclose(np.asarray(out4), np.asarray(ref_out3),
                       atol=5e-3, rtol=5e-3), "out mismatch (cross-attn path)"
    assert np.allclose(np.asarray(attn4.astype(jnp.float32)), np.asarray(ref_attn3),
                       atol=1e-2, rtol=5e-2), "attn mismatch (cross-attn path)"

    print("KERNEL_OK")
</pallas_src>

<mosaic_0001>
module attributes {stable_mosaic.version = 11 : i64} {
  func.func @kernel(%arg0: i32, %arg1: i32, %arg2: memref<1x8x32xf32, #tpu.memory_space<vmem>>, %arg3: memref<1x8x32xf32, #tpu.memory_space<vmem>>, %arg4: memref<32x32xf32, #tpu.memory_space<vmem>>, %arg5: memref<32x64xf32, #tpu.memory_space<vmem>>, %arg6: memref<32x32xf32, #tpu.memory_space<vmem>>, %arg7: memref<1x32xf32, #tpu.memory_space<vmem>>, %arg8: memref<1x32xf32, #tpu.memory_space<vmem>>, %arg9: memref<1x8x32xf32, #tpu.memory_space<vmem>>, %arg10: memref<1x4x8x8xbf16, #tpu.memory_space<vmem>>, %arg11: memref<8x32xf32, #tpu.memory_space<vmem>>, %arg12: memref<8x32xf32, #tpu.memory_space<vmem>>) attributes {dimension_semantics = [#tpu.dimension_semantics<parallel>, #tpu.dimension_semantics<arbitrary>], iteration_bounds = array<i64: 2, 1>, scalar_prefetch = 0 : i64, scratch_operands = 2 : i64, tpu.core_type = #tpu.core_type<tc>, window_params = [{transform_indices = @transform_0, window_bounds = array<i64: 1, 8, 32>}, {transform_indices = @transform_1, window_bounds = array<i64: 1, 8, 32>}, {pipeline_mode = #tpu.pipeline_mode<synchronous>, transform_indices = @transform_2, window_bounds = array<i64: 32, 32>}, {pipeline_mode = #tpu.pipeline_mode<synchronous>, transform_indices = @transform_3, window_bounds = array<i64: 32, 64>}, {pipeline_mode = #tpu.pipeline_mode<synchronous>, transform_indices = @transform_4, window_bounds = array<i64: 32, 32>}, {pipeline_mode = #tpu.pipeline_mode<synchronous>, transform_indices = @transform_5, window_bounds = array<i64: 1, 32>}, {pipeline_mode = #tpu.pipeline_mode<synchronous>, transform_indices = @transform_6, window_bounds = array<i64: 1, 32>}, {transform_indices = @transform_7, window_bounds = array<i64: 1, 8, 32>}, {transform_indices = @transform_8, window_bounds = array<i64: 1, 4, 8, 8>}]} {
    %c0_i32 = arith.constant 0 : i32
    %0 = arith.cmpi eq, %arg1, %c0_i32 : i32
    %1 = arith.extui %0 : i1 to i32
    %c0_i32_0 = arith.constant 0 : i32
    %2 = arith.cmpi ne, %1, %c0_i32_0 : i32
    scf.if %2 {
      %c0_33 = arith.constant 0 : index
      %c0_34 = arith.constant 0 : index
      %c0_35 = arith.constant 0 : index
      %62 = vector.load %arg3[%c0_33, %c0_34, %c0_35] : memref<1x8x32xf32, #tpu.memory_space<vmem>>, vector<1x8x32xf32>
      %63 = vector.shape_cast %62 : vector<1x8x32xf32> to vector<8x32xf32>
      %c0_36 = arith.constant 0 : index
      %c0_37 = arith.constant 0 : index
      %64 = vector.load %arg5[%c0_36, %c0_37] : memref<32x64xf32, #tpu.memory_space<vmem>>, vector<32x64xf32>
      %cst_38 = arith.constant dense<0.000000e+00> : vector<8x64xf32>
      %65 = tpu.matmul %63, %64, %cst_38 {dimension_numbers = #tpu.dot_dimension_numbers<[1], [0], [0], [1], [0, 0, 1, 1], [], []>} : vector<8x32xf32>, vector<32x64xf32>, vector<8x64xf32> -> vector<8x64xf32>
      %66 = vector.extract_strided_slice %65 {offsets = [0, 0], sizes = [8, 32], strides = [1, 1]} : vector<8x64xf32> to vector<8x32xf32>
      %c0_39 = arith.constant 0 : index
      %c0_40 = arith.constant 0 : index
      %67 = vector.load %arg11[%c0_39, %c0_40] : memref<8x32xf32, #tpu.memory_space<vmem>>, vector<8x32xf32>
      tpu.vector_store %arg11[%c0_39, %c0_40], %66 {strides = array<i32>} : memref<8x32xf32, #tpu.memory_space<vmem>>, vector<8x32xf32>,
      %68 = vector.extract_strided_slice %65 {offsets = [0, 32], sizes = [8, 32], strides = [1, 1]} : vector<8x64xf32> to vector<8x32xf32>
      %c0_41 = arith.constant 0 : index
      %c0_42 = arith.constant 0 : index
      %69 = vector.load %arg12[%c0_41, %c0_42] : memref<8x32xf32, #tpu.memory_space<vmem>>, vector<8x32xf32>
      tpu.vector_store %arg12[%c0_41, %c0_42], %68 {strides = array<i32>} : memref<8x32xf32, #tpu.memory_space<vmem>>, vector<8x32xf32>,
    } else {
    }
    %c0 = arith.constant 0 : index
    %c0_1 = arith.constant 0 : index
    %c0_2 = arith.constant 0 : index
    %3 = vector.load %arg2[%c0, %c0_1, %c0_2] : memref<1x8x32xf32, #tpu.memory_space<vmem>>, vector<1x8x32xf32>
    %4 = vector.shape_cast %3 : vector<1x8x32xf32> to vector<8x32xf32>
    %c0_3 = arith.constant 0 : index
    %c0_4 = arith.constant 0 : index
    %5 = vector.load %arg4[%c0_3, %c0_4] : memref<32x32xf32, #tpu.memory_space<vmem>>, vector<32x32xf32>
    %cst = arith.constant dense<0.000000e+00> : vector<8x32xf32>
    %6 = tpu.matmul %4, %5, %cst {dimension_numbers = #tpu.dot_dimension_numbers<[1], [0], [0], [1], [0, 0, 1, 1], [], []>} : vector<8x32xf32>, vector<32x32xf32>, vector<8x32xf32> -> vector<8x32xf32>
    %cst_5 = arith.constant 0.353553385 : f32
    %7 = vector.broadcast %cst_5 : f32 to vector<8x32xf32>
    %8 = arith.mulf %6, %7 : vector<8x32xf32>
    %9 = vector.shape_cast %8 : vector<8x32xf32> to vector<8x4x8xf32>
    %c0_6 = arith.constant 0 : index
    %c0_7 = arith.constant 0 : index
    %10 = vector.load %arg11[%c0_6, %c0_7] : memref<8x32xf32, #tpu.memory_space<vmem>>, vector<8x32xf32>
    %11 = vector.shape_cast %10 : vector<8x32xf32> to vector<8x4x8xf32>
    %c0_8 = arith.constant 0 : index
    %c0_9 = arith.constant 0 : index
    %12 = vector.load %arg12[%c0_8, %c0_9] : memref<8x32xf32, #tpu.memory_space<vmem>>, vector<8x32xf32>
    %13 = vector.shape_cast %12 : vector<8x32xf32> to vector<8x4x8xf32>
    "tpu.trace_start"() <{level = 10 : i32, message = "qhd,khd->hqk"}> : () -> ()
    %cst_10 = arith.constant dense<0.000000e+00> : vector<4x8x8xf32>
    %14 = tpu.matmul %9, %11, %cst_10 {dimension_numbers = #tpu.dot_dimension_numbers<[2], [2], [0], [0], [0, 1, 0, 0, 1, 0], [1], [1]>} : vector<8x4x8xf32>, vector<8x4x8xf32>, vector<4x8x8xf32> -> vector<4x8x8xf32>
    "tpu.trace_stop"() : () -> ()
    %cst_11 = arith.constant dense<0xFF800000> : vector<4x8xf32>
    %15 = vector.multi_reduction <maximumf>, %14, %cst_11 [2] : vector<4x8x8xf32> to vector<4x8xf32>
    %16 = vector.shape_cast %15 : vector<4x8xf32> to vector<4x8x1xf32>
    %17 = vector.broadcast %16 : vector<4x8x1xf32> to vector<4x8x8xf32>
    %18 = arith.subf %14, %17 : vector<4x8x8xf32>
    %19 = math.exp %18 : vector<4x8x8xf32>
    %cst_12 = arith.constant dense<0.000000e+00> : vector<4x8xf32>
    %20 = vector.multi_reduction <add>, %19, %cst_12 [2] : vector<4x8x8xf32> to vector<4x8xf32>
    %21 = vector.shape_cast %20 : vector<4x8xf32> to vector<4x8x1xf32>
    %22 = tpu.reciprocal %21 {approx = true} : vector<4x8x1xf32> -> vector<4x8x1xf32>
    %23 = vector.broadcast %22 : vector<4x8x1xf32> to vector<4x8x8xf32>
    %24 = arith.mulf %19, %23 : vector<4x8x8xf32>
    %25 = arith.truncf %24 : vector<4x8x8xf32> to vector<4x8x8xbf16>
    %c0_13 = arith.constant 0 : index
    %c0_14 = arith.constant 0 : index
    %c0_15 = arith.constant 0 : index
    %c0_16 = arith.constant 0 : index
    %26 = vector.load %arg10[%c0_13, %c0_14, %c0_15, %c0_16] : memref<1x4x8x8xbf16, #tpu.memory_space<vmem>>, vector<1x4x8x8xbf16>
    %27 = vector.shape_cast %26 : vector<1x4x8x8xbf16> to vector<4x8x8xbf16>
    %28 = vector.shape_cast %25 : vector<4x8x8xbf16> to vector<1x4x8x8xbf16>
    tpu.vector_store %arg10[%c0_13, %c0_14, %c0_15, %c0_16], %28 {strides = array<i32>} : memref<1x4x8x8xbf16, #tpu.memory_space<vmem>>, vector<1x4x8x8xbf16>,
    "tpu.trace_start"() <{level = 10 : i32, message = "hqk,khd->qhd"}> : () -> ()
    %cst_17 = arith.constant dense<0.000000e+00> : vector<4x8x8xf32>
    %29 = tpu.matmul %13, %24, %cst_17 {dimension_numbers = #tpu.dot_dimension_numbers<[0], [2], [2], [1], [0, 1, 0, 2, 1, 1], [1], [0]>} : vector<8x4x8xf32>, vector<4x8x8xf32>, vector<4x8x8xf32> -> vector<4x8x8xf32>
    %30 = tpu.transpose %29, [2, 0, 1] : vector<4x8x8xf32> -> vector<8x4x8xf32>
    "tpu.trace_stop"() : () -> ()
    %31 = vector.shape_cast %30 : vector<8x4x8xf32> to vector<8x32xf32>
    %c0_18 = arith.constant 0 : index
    %c0_19 = arith.constant 0 : index
    %32 = vector.load %arg6[%c0_18, %c0_19] : memref<32x32xf32, #tpu.memory_space<vmem>>, vector<32x32xf32>
    %cst_20 = arith.constant dense<0.000000e+00> : vector<8x32xf32>
    %33 = tpu.matmul %31, %32, %cst_20 {dimension_numbers = #tpu.dot_dimension_numbers<[1], [0], [0], [1], [0, 0, 1, 1], [], []>} : vector<8x32xf32>, vector<32x32xf32>, vector<8x32xf32> -> vector<8x32xf32>
    %34 = arith.addf %33, %4 : vector<8x32xf32>
    %cst_21 = arith.constant dense<0.000000e+00> : vector<8xf32>
    %35 = vector.multi_reduction <add>, %34, %cst_21 [1] : vector<8x32xf32> to vector<8xf32>
    %36 = vector.shape_cast %35 : vector<8xf32> to vector<8x1xf32>
    %cst_22 = arith.constant 3.200000e+01 : f32
    %37 = vector.broadcast %cst_22 : f32 to vector<8x1xf32>
    %38 = arith.divf %36, %37 : vector<8x1xf32>
    %39 = vector.broadcast %38 : vector<8x1xf32> to vector<8x32xf32>
    %40 = arith.subf %34, %39 : vector<8x32xf32>
    %41 = arith.mulf %40, %40 : vector<8x32xf32>
    %cst_23 = arith.constant dense<0.000000e+00> : vector<8xf32>
    %42 = vector.multi_reduction <add>, %41, %cst_23 [1] : vector<8x32xf32> to vector<8xf32>
    %43 = vector.shape_cast %42 : vector<8xf32> to vector<8x1xf32>
    %cst_24 = arith.constant 3.200000e+01 : f32
    %44 = vector.broadcast %cst_24 : f32 to vector<8x1xf32>
    %45 = arith.divf %43, %44 : vector<8x1xf32>
    %46 = vector.broadcast %38 : vector<8x1xf32> to vector<8x32xf32>
    %47 = arith.subf %34, %46 : vector<8x32xf32>
    %cst_25 = arith.constant 9.99999997E-7 : f32
    %48 = vector.broadcast %cst_25 : f32 to vector<8x1xf32>
    %49 = arith.addf %45, %48 : vector<8x1xf32>
    %50 = math.rsqrt %49 : vector<8x1xf32>
    %51 = vector.broadcast %50 : vector<8x1xf32> to vector<8x32xf32>
    %52 = arith.mulf %47, %51 : vector<8x32xf32>
    %c0_26 = arith.constant 0 : index
    %c0_27 = arith.constant 0 : index
    %53 = vector.load %arg7[%c0_26, %c0_27] : memref<1x32xf32, #tpu.memory_space<vmem>>, vector<1x32xf32>
    %54 = vector.broadcast %53 : vector<1x32xf32> to vector<8x32xf32>
    %55 = arith.mulf %52, %54 : vector<8x32xf32>
    %c0_28 = arith.constant 0 : index
    %c0_29 = arith.constant 0 : index
    %56 = vector.load %arg8[%c0_28, %c0_29] : memref<1x32xf32, #tpu.memory_space<vmem>>, vector<1x32xf32>
    %57 = vector.broadcast %56 : vector<1x32xf32> to vector<8x32xf32>
    %58 = arith.addf %55, %57 : vector<8x32xf32>
    %c0_30 = arith.constant 0 : index
    %c0_31 = arith.constant 0 : index
    %c0_32 = arith.constant 0 : index
    %59 = vector.load %arg9[%c0_30, %c0_31, %c0_32] : memref<1x8x32xf32, #tpu.memory_space<vmem>>, vector<1x8x32xf32>
    %60 = vector.shape_cast %59 : vector<1x8x32xf32> to vector<8x32xf32>
    %61 = vector.shape_cast %58 : vector<8x32xf32> to vector<1x8x32xf32>
    tpu.vector_store %arg9[%c0_30, %c0_31, %c0_32], %61 {strides = array<i32>} : memref<1x8x32xf32, #tpu.memory_space<vmem>>, vector<1x8x32xf32>,
    return
  }
  func.func @transform_0(%arg0: i32, %arg1: i32) -> (i32, i32, i32) {
    %c0_i32 = arith.constant 0 : i32
    %c0_i32_0 = arith.constant 0 : i32
    return %arg0, %arg1, %c0_i32 : i32, i32, i32
  }
  func.func @transform_1(%arg0: i32, %arg1: i32) -> (i32, i32, i32) {
    %c0_i32 = arith.constant 0 : i32
    %c0_i32_0 = arith.constant 0 : i32
    %c0_i32_1 = arith.constant 0 : i32
    return %arg0, %c0_i32, %c0_i32_0 : i32, i32, i32
  }
  func.func @transform_2(%arg0: i32, %arg1: i32) -> (i32, i32) {
    %c0_i32 = arith.constant 0 : i32
    %c0_i32_0 = arith.constant 0 : i32
    %c0_i32_1 = arith.constant 0 : i32
    return %c0_i32, %c0_i32_0 : i32, i32
  }
  func.func @transform_3(%arg0: i32, %arg1: i32) -> (i32, i32) {
    %c0_i32 = arith.constant 0 : i32
    %c0_i32_0 = arith.constant 0 : i32
    %c0_i32_1 = arith.constant 0 : i32
    return %c0_i32, %c0_i32_0 : i32, i32
  }
  func.func @transform_4(%arg0: i32, %arg1: i32) -> (i32, i32) {
    %c0_i32 = arith.constant 0 : i32
    %c0_i32_0 = arith.constant 0 : i32
    %c0_i32_1 = arith.constant 0 : i32
    return %c0_i32, %c0_i32_0 : i32, i32
  }
  func.func @transform_5(%arg0: i32, %arg1: i32) -> (i32, i32) {
    %c0_i32 = arith.constant 0 : i32
    %c0_i32_0 = arith.constant 0 : i32
    %c0_i32_1 = arith.constant 0 : i32
    return %c0_i32, %c0_i32_0 : i32, i32
  }
  func.func @transform_6(%arg0: i32, %arg1: i32) -> (i32, i32) {
    %c0_i32 = arith.constant 0 : i32
    %c0_i32_0 = arith.constant 0 : i32
    %c0_i32_1 = arith.constant 0 : i32
    return %c0_i32, %c0_i32_0 : i32, i32
  }
  func.func @transform_7(%arg0: i32, %arg1: i32) -> (i32, i32, i32) {
    %c0_i32 = arith.constant 0 : i32
    %c0_i32_0 = arith.constant 0 : i32
    return %arg0, %arg1, %c0_i32 : i32, i32, i32
  }
  func.func @transform_8(%arg0: i32, %arg1: i32) -> (i32, i32, i32, i32) {
    %c0_i32 = arith.constant 0 : i32
    %c0_i32_0 = arith.constant 0 : i32
    %c0_i32_1 = arith.constant 0 : i32
    return %arg0, %c0_i32, %arg1, %c0_i32_0 : i32, i32, i32, i32
  }
}

module attributes {stable_mosaic.version = 11 : i64} {
  func.func @kernel(%arg0: i32, %arg1: i32, %arg2: memref<1x8x32xf32, #tpu.memory_space<vmem>>, %arg3: memref<1x8x32xf32, #tpu.memory_space<vmem>>, %arg4: memref<32x32xf32, #tpu.memory_space<vmem>>, %arg5: memref<32x64xf32, #tpu.memory_space<vmem>>, %arg6: memref<32x32xf32, #tpu.memory_space<vmem>>, %arg7: memref<1x32xf32, #tpu.memory_space<vmem>>, %arg8: memref<1x32xf32, #tpu.memory_space<vmem>>, %arg9: memref<1x8x32xf32, #tpu.memory_space<vmem>>, %arg10: memref<1x4x8x8xbf16, #tpu.memory_space<vmem>>, %arg11: memref<8x32xf32, #tpu.memory_space<vmem>>, %arg12: memref<8x32xf32, #tpu.memory_space<vmem>>) attributes {dimension_semantics = [#tpu.dimension_semantics<parallel>, #tpu.dimension_semantics<arbitrary>], iteration_bounds = array<i64: 2, 1>, scalar_prefetch = 0 : i64, scratch_operands = 2 : i64, tpu.core_type = #tpu.core_type<tc>, window_params = [{transform_indices = @transform_0, window_bounds = array<i64: 1, 8, 32>}, {transform_indices = @transform_1, window_bounds = array<i64: 1, 8, 32>}, {pipeline_mode = #tpu.pipeline_mode<synchronous>, transform_indices = @transform_2, window_bounds = array<i64: 32, 32>}, {pipeline_mode = #tpu.pipeline_mode<synchronous>, transform_indices = @transform_3, window_bounds = array<i64: 32, 64>}, {pipeline_mode = #tpu.pipeline_mode<synchronous>, transform_indices = @transform_4, window_bounds = array<i64: 32, 32>}, {pipeline_mode = #tpu.pipeline_mode<synchronous>, transform_indices = @transform_5, window_bounds = array<i64: 1, 32>}, {pipeline_mode = #tpu.pipeline_mode<synchronous>, transform_indices = @transform_6, window_bounds = array<i64: 1, 32>}, {transform_indices = @transform_7, window_bounds = array<i64: 1, 8, 32>}, {transform_indices = @transform_8, window_bounds = array<i64: 1, 4, 8, 8>}]} {
    %c0_i32 = arith.constant 0 : i32
    %0 = arith.cmpi eq, %arg1, %c0_i32 : i32
    %1 = arith.extui %0 : i1 to i32
    %c0_i32_0 = arith.constant 0 : i32
    %2 = arith.cmpi ne, %1, %c0_i32_0 : i32
    scf.if %2 {
      %c0_33 = arith.constant 0 : index
      %c0_34 = arith.constant 0 : index
      %c0_35 = arith.constant 0 : index
      %62 = vector.load %arg3[%c0_33, %c0_34, %c0_35] : memref<1x8x32xf32, #tpu.memory_space<vmem>>, vector<1x8x32xf32>
      %63 = vector.shape_cast %62 : vector<1x8x32xf32> to vector<8x32xf32>
      %c0_36 = arith.constant 0 : index
      %c0_37 = arith.constant 0 : index
      %64 = vector.load %arg5[%c0_36, %c0_37] : memref<32x64xf32, #tpu.memory_space<vmem>>, vector<32x64xf32>
      %cst_38 = arith.constant dense<0.000000e+00> : vector<8x64xf32>
      %65 = tpu.matmul %63, %64, %cst_38 {dimension_numbers = #tpu.dot_dimension_numbers<[1], [0], [0], [1], [0, 0, 1, 1], [], []>} : vector<8x32xf32>, vector<32x64xf32>, vector<8x64xf32> -> vector<8x64xf32>
      %66 = vector.extract_strided_slice %65 {offsets = [0, 0], sizes = [8, 32], strides = [1, 1]} : vector<8x64xf32> to vector<8x32xf32>
      %c0_39 = arith.constant 0 : index
      %c0_40 = arith.constant 0 : index
      %67 = vector.load %arg11[%c0_39, %c0_40] : memref<8x32xf32, #tpu.memory_space<vmem>>, vector<8x32xf32>
      tpu.vector_store %arg11[%c0_39, %c0_40], %66 {strides = array<i32>} : memref<8x32xf32, #tpu.memory_space<vmem>>, vector<8x32xf32>,
      %68 = vector.extract_strided_slice %65 {offsets = [0, 32], sizes = [8, 32], strides = [1, 1]} : vector<8x64xf32> to vector<8x32xf32>
      %c0_41 = arith.constant 0 : index
      %c0_42 = arith.constant 0 : index
      %69 = vector.load %arg12[%c0_41, %c0_42] : memref<8x32xf32, #tpu.memory_space<vmem>>, vector<8x32xf32>
      tpu.vector_store %arg12[%c0_41, %c0_42], %68 {strides = array<i32>} : memref<8x32xf32, #tpu.memory_space<vmem>>, vector<8x32xf32>,
    } else {
    }
    %c0 = arith.constant 0 : index
    %c0_1 = arith.constant 0 : index
    %c0_2 = arith.constant 0 : index
    %3 = vector.load %arg2[%c0, %c0_1, %c0_2] : memref<1x8x32xf32, #tpu.memory_space<vmem>>, vector<1x8x32xf32>
    %4 = vector.shape_cast %3 : vector<1x8x32xf32> to vector<8x32xf32>
    %c0_3 = arith.constant 0 : index
    %c0_4 = arith.constant 0 : index
    %5 = vector.load %arg4[%c0_3, %c0_4] : memref<32x32xf32, #tpu.memory_space<vmem>>, vector<32x32xf32>
    %cst = arith.constant dense<0.000000e+00> : vector<8x32xf32>
    %6 = tpu.matmul %4, %5, %cst {dimension_numbers = #tpu.dot_dimension_numbers<[1], [0], [0], [1], [0, 0, 1, 1], [], []>} : vector<8x32xf32>, vector<32x32xf32>, vector<8x32xf32> -> vector<8x32xf32>
    %cst_5 = arith.constant 0.353553385 : f32
    %7 = vector.broadcast %cst_5 : f32 to vector<8x32xf32>
    %8 = arith.mulf %6, %7 : vector<8x32xf32>
    %9 = vector.shape_cast %8 : vector<8x32xf32> to vector<8x4x8xf32>
    %c0_6 = arith.constant 0 : index
    %c0_7 = arith.constant 0 : index
    %10 = vector.load %arg11[%c0_6, %c0_7] : memref<8x32xf32, #tpu.memory_space<vmem>>, vector<8x32xf32>
    %11 = vector.shape_cast %10 : vector<8x32xf32> to vector<8x4x8xf32>
    %c0_8 = arith.constant 0 : index
    %c0_9 = arith.constant 0 : index
    %12 = vector.load %arg12[%c0_8, %c0_9] : memref<8x32xf32, #tpu.memory_space<vmem>>, vector<8x32xf32>
    %13 = vector.shape_cast %12 : vector<8x32xf32> to vector<8x4x8xf32>
    "tpu.trace_start"() <{level = 10 : i32, message = "qhd,khd->hqk"}> : () -> ()
    %cst_10 = arith.constant dense<0.000000e+00> : vector<4x8x8xf32>
    %14 = tpu.matmul %9, %11, %cst_10 {dimension_numbers = #tpu.dot_dimension_numbers<[2], [2], [0], [0], [0, 1, 0, 0, 1, 0], [1], [1]>} : vector<8x4x8xf32>, vector<8x4x8xf32>, vector<4x8x8xf32> -> vector<4x8x8xf32>
    "tpu.trace_stop"() : () -> ()
    %cst_11 = arith.constant dense<0xFF800000> : vector<4x8xf32>
    %15 = vector.multi_reduction <maximumf>, %14, %cst_11 [2] : vector<4x8x8xf32> to vector<4x8xf32>
    %16 = vector.shape_cast %15 : vector<4x8xf32> to vector<4x8x1xf32>
    %17 = vector.broadcast %16 : vector<4x8x1xf32> to vector<4x8x8xf32>
    %18 = arith.subf %14, %17 : vector<4x8x8xf32>
    %19 = math.exp %18 : vector<4x8x8xf32>
    %cst_12 = arith.constant dense<0.000000e+00> : vector<4x8xf32>
    %20 = vector.multi_reduction <add>, %19, %cst_12 [2] : vector<4x8x8xf32> to vector<4x8xf32>
    %21 = vector.shape_cast %20 : vector<4x8xf32> to vector<4x8x1xf32>
    %22 = tpu.reciprocal %21 {approx = true} : vector<4x8x1xf32> -> vector<4x8x1xf32>
    %23 = vector.broadcast %22 : vector<4x8x1xf32> to vector<4x8x8xf32>
    %24 = arith.mulf %19, %23 : vector<4x8x8xf32>
    %25 = arith.truncf %24 : vector<4x8x8xf32> to vector<4x8x8xbf16>
    %c0_13 = arith.constant 0 : index
    %c0_14 = arith.constant 0 : index
    %c0_15 = arith.constant 0 : index
    %c0_16 = arith.constant 0 : index
    %26 = vector.load %arg10[%c0_13, %c0_14, %c0_15, %c0_16] : memref<1x4x8x8xbf16, #tpu.memory_space<vmem>>, vector<1x4x8x8xbf16>
    %27 = vector.shape_cast %26 : vector<1x4x8x8xbf16> to vector<4x8x8xbf16>
    %28 = vector.shape_cast %25 : vector<4x8x8xbf16> to vector<1x4x8x8xbf16>
    tpu.vector_store %arg10[%c0_13, %c0_14, %c0_15, %c0_16], %28 {strides = array<i32>} : memref<1x4x8x8xbf16, #tpu.memory_space<vmem>>, vector<1x4x8x8xbf16>,
    "tpu.trace_start"() <{level = 10 : i32, message = "hqk,khd->qhd"}> : () -> ()
    %cst_17 = arith.constant dense<0.000000e+00> : vector<4x8x8xf32>
    %29 = tpu.matmul %13, %24, %cst_17 {dimension_numbers = #tpu.dot_dimension_numbers<[0], [2], [2], [1], [0, 1, 0, 2, 1, 1], [1], [0]>} : vector<8x4x8xf32>, vector<4x8x8xf32>, vector<4x8x8xf32> -> vector<4x8x8xf32>
    %30 = tpu.transpose %29, [2, 0, 1] : vector<4x8x8xf32> -> vector<8x4x8xf32>
    "tpu.trace_stop"() : () -> ()
    %31 = vector.shape_cast %30 : vector<8x4x8xf32> to vector<8x32xf32>
    %c0_18 = arith.constant 0 : index
    %c0_19 = arith.constant 0 : index
    %32 = vector.load %arg6[%c0_18, %c0_19] : memref<32x32xf32, #tpu.memory_space<vmem>>, vector<32x32xf32>
    %cst_20 = arith.constant dense<0.000000e+00> : vector<8x32xf32>
    %33 = tpu.matmul %31, %32, %cst_20 {dimension_numbers = #tpu.dot_dimension_numbers<[1], [0], [0], [1], [0, 0, 1, 1], [], []>} : vector<8x32xf32>, vector<32x32xf32>, vector<8x32xf32> -> vector<8x32xf32>
    %34 = arith.addf %33, %4 : vector<8x32xf32>
    %cst_21 = arith.constant dense<0.000000e+00> : vector<8xf32>
    %35 = vector.multi_reduction <add>, %34, %cst_21 [1] : vector<8x32xf32> to vector<8xf32>
    %36 = vector.shape_cast %35 : vector<8xf32> to vector<8x1xf32>
    %cst_22 = arith.constant 3.200000e+01 : f32
    %37 = vector.broadcast %cst_22 : f32 to vector<8x1xf32>
    %38 = arith.divf %36, %37 : vector<8x1xf32>
    %39 = vector.broadcast %38 : vector<8x1xf32> to vector<8x32xf32>
    %40 = arith.subf %34, %39 : vector<8x32xf32>
    %41 = arith.mulf %40, %40 : vector<8x32xf32>
    %cst_23 = arith.constant dense<0.000000e+00> : vector<8xf32>
    %42 = vector.multi_reduction <add>, %41, %cst_23 [1] : vector<8x32xf32> to vector<8xf32>
    %43 = vector.shape_cast %42 : vector<8xf32> to vector<8x1xf32>
    %cst_24 = arith.constant 3.200000e+01 : f32
    %44 = vector.broadcast %cst_24 : f32 to vector<8x1xf32>
    %45 = arith.divf %43, %44 : vector<8x1xf32>
    %46 = vector.broadcast %38 : vector<8x1xf32> to vector<8x32xf32>
    %47 = arith.subf %34, %46 : vector<8x32xf32>
    %cst_25 = arith.constant 9.99999997E-7 : f32
    %48 = vector.broadcast %cst_25 : f32 to vector<8x1xf32>
    %49 = arith.addf %45, %48 : vector<8x1xf32>
    %50 = math.rsqrt %49 : vector<8x1xf32>
    %51 = vector.broadcast %50 : vector<8x1xf32> to vector<8x32xf32>
    %52 = arith.mulf %47, %51 : vector<8x32xf32>
    %c0_26 = arith.constant 0 : index
    %c0_27 = arith.constant 0 : index
    %53 = vector.load %arg7[%c0_26, %c0_27] : memref<1x32xf32, #tpu.memory_space<vmem>>, vector<1x32xf32>
    %54 = vector.broadcast %53 : vector<1x32xf32> to vector<8x32xf32>
    %55 = arith.mulf %52, %54 : vector<8x32xf32>
    %c0_28 = arith.constant 0 : index
    %c0_29 = arith.constant 0 : index
    %56 = vector.load %arg8[%c0_28, %c0_29] : memref<1x32xf32, #tpu.memory_space<vmem>>, vector<1x32xf32>
    %57 = vector.broadcast %56 : vector<1x32xf32> to vector<8x32xf32>
    %58 = arith.addf %55, %57 : vector<8x32xf32>
    %c0_30 = arith.constant 0 : index
    %c0_31 = arith.constant 0 : index
    %c0_32 = arith.constant 0 : index
    %59 = vector.load %arg9[%c0_30, %c0_31, %c0_32] : memref<1x8x32xf32, #tpu.memory_space<vmem>>, vector<1x8x32xf32>
    %60 = vector.shape_cast %59 : vector<1x8x32xf32> to vector<8x32xf32>
    %61 = vector.shape_cast %58 : vector<8x32xf32> to vector<1x8x32xf32>
    tpu.vector_store %arg9[%c0_30, %c0_31, %c0_32], %61 {strides = array<i32>} : memref<1x8x32xf32, #tpu.memory_space<vmem>>, vector<1x8x32xf32>,
    return
  }
  func.func @transform_0(%arg0: i32, %arg1: i32) -> (i32, i32, i32) {
    %c0_i32 = arith.constant 0 : i32
    %c0_i32_0 = arith.constant 0 : i32
    return %arg0, %arg1, %c0_i32 : i32, i32, i32
  }
  func.func @transform_1(%arg0: i32, %arg1: i32) -> (i32, i32, i32) {
    %c0_i32 = arith.constant 0 : i32
    %c0_i32_0 = arith.constant 0 : i32
    %c0_i32_1 = arith.constant 0 : i32
    return %arg0, %c0_i32, %c0_i32_0 : i32, i32, i32
  }
  func.func @transform_2(%arg0: i32, %arg1: i32) -> (i32, i32) {
    %c0_i32 = arith.constant 0 : i32
    %c0_i32_0 = arith.constant 0 : i32
    %c0_i32_1 = arith.constant 0 : i32
    return %c0_i32, %c0_i32_0 : i32, i32
  }
  func.func @transform_3(%arg0: i32, %arg1: i32) -> (i32, i32) {
    %c0_i32 = arith.constant 0 : i32
    %c0_i32_0 = arith.constant 0 : i32
    %c0_i32_1 = arith.constant 0 : i32
    return %c0_i32, %c0_i32_0 : i32, i32
  }
  func.func @transform_4(%arg0: i32, %arg1: i32) -> (i32, i32) {
    %c0_i32 = arith.constant 0 : i32
    %c0_i32_0 = arith.constant 0 : i32
    %c0_i32_1 = arith.constant 0 : i32
    return %c0_i32, %c0_i32_0 : i32, i32
  }
  func.func @transform_5(%arg0: i32, %arg1: i32) -> (i32, i32) {
    %c0_i32 = arith.constant 0 : i32
    %c0_i32_0 = arith.constant 0 : i32
    %c0_i32_1 = arith.constant 0 : i32
    return %c0_i32, %c0_i32_0 : i32, i32
  }
  func.func @transform_6(%arg0: i32, %arg1: i32) -> (i32, i32) {
    %c0_i32 = arith.constant 0 : i32
    %c0_i32_0 = arith.constant 0 : i32
    %c0_i32_1 = arith.constant 0 : i32
    return %c0_i32, %c0_i32_0 : i32, i32
  }
  func.func @transform_7(%arg0: i32, %arg1: i32) -> (i32, i32, i32) {
    %c0_i32 = arith.constant 0 : i32
    %c0_i32_0 = arith.constant 0 : i32
    return %arg0, %arg1, %c0_i32 : i32, i32, i32
  }
  func.func @transform_8(%arg0: i32, %arg1: i32) -> (i32, i32, i32, i32) {
    %c0_i32 = arith.constant 0 : i32
    %c0_i32_0 = arith.constant 0 : i32
    %c0_i32_1 = arith.constant 0 : i32
    return %arg0, %c0_i32, %arg1, %c0_i32_0 : i32, i32, i32, i32
  }
}

</mosaic_0001>

<bundles_post_ra>
// kernel: tpu_custom_call.1
= control target key start
LH: loop header
LB: loop body
LE: loop exit
PB: predicated region body
PF: predicated region fallthrough
CT: control target
= control target key end

     0   :  { %s2382_s0 = inlined_call_operand.hbm [shape: f32[2,8,32], index: 0, kind: input, shape index: {}]   ;;  %s2383_s1 = inlined_call_operand.hbm [shape: f32[2,8,32], index: 1, kind: input, shape index: {}]   ;;  %s2384_s2 = inlined_call_operand.hbm [shape: f32[32,32], index: 2, kind: input, shape index: {}]   ;;  %s2385_s3 = inlined_call_operand.hbm [shape: f32[32,64], index: 3, kind: input, shape index: {}]   ;;  %s2386_s4 = inlined_call_operand.hbm [shape: f32[32,32], index: 4, kind: input, shape index: {}]   ;;  %s2387_s5 = inlined_call_operand.vmem [shape: f32[1,32], index: 5, kind: input, shape index: {}]   ;;  %s2388_s6 = inlined_call_operand.vmem [shape: f32[1,32], index: 6, kind: input, shape index: {}]   ;;  %s2389_s7 = inlined_call_operand.hbm [shape: f32[2,8,32], index: 7, kind: output, shape index: {0}]   ;;  %s2390_s8 = inlined_call_operand.hbm [shape: bf16[2,4,8,8], index: 8, kind: output, shape index: {1}]  }
   0x1   :  { %2396 = sst [smem:[#allocation28_spill]] %s2384_s2 }
   0x2   :  { %2397 = sst [smem:[#allocation29_spill]] %s2385_s3 }
   0x3   :  { %2398 = sst [smem:[#allocation30_spill]] %s2386_s4 }
   0x4   :  { %14 = vsyncpa [#allocation5], 0 }
   0x5   :  { %16 = vsyncpa [#allocation5 + $0x1], 0 }
   0x6   :  { %17 = vsyncpa [#allocation8], 0 }
   0x7   :  { %19 = vsyncpa [#allocation8 + $0x1], 0 }
   0x8   :  { %20 = vsyncpa [#allocation11], 0 }
   0x9   :  { %21 = vsyncpa [#allocation6], 0 }
   0xa   :  { %23 = vsyncpa [#allocation6 + $0x1], 0 }
   0xb   :  { %24 = vsyncpa [#allocation15], 0 }
   0xc   :  { %26 = vsyncpa [#allocation15 + $0x1], 0  ;;  %s2106_s27 = smov 0   ;;  %s2108_s28 = smov 0  }
   0xd   :  { %s2110_s29 = smov 0   ;;  %s2112_s30 = smov 0  }
   0xe   :  { %s2114_s9 = smov 0   ;;  %s2116_s10 = smov 0  }
   0xf LB: > { %2399 = sst [smem:[#allocation22_spill]] %s2022_s27  ;;  %s2137_s11 = sadd.s32 4294967295, %s2042_s10   ;;  %s2042_s10 = sphi %s2116_s10, %s32_s10   ;;  %s2038_s9 = sphi %s2114_s9, %s2419_s9   ;;  %s2034_s30 = sphi %s2112_s30, %s2418_s30   ;;  %s2030_s29 = sphi %s2110_s29, %s2417_s29   ;;  %s2026_s28 = sphi %s2108_s28, %s2421_s28   ;;  %s2022_s27 = sphi %s2106_s27, %s2420_s27  }
  0x10   : > { %2400 = sst [smem:[#allocation23_spill]] %s2030_s29  ;;  %p1572_p0 = scmp.ge.s32.totalorder %s2042_s10, 1 }
  0x11   : > { %2401 = sst [smem:[#allocation24_spill]] %s2038_s9  ;;  %p67_p1 = scmp.eq.s32.totalorder %s2137_s11, 0 }
  0x12   : > { %p264_p2 = scmp.lt.s32.totalorder %s2042_s10, 3  ;;  %s2402_s2 = sld [smem:[#allocation28_spill]] }
  0x13   : > { %s2044_s16 = smov [#allocation9]   ;;  %p1576_p6 = scmp.ge.s32.totalorder %s2042_s10, 2 }
  0x14   : > { %p2145_p3 = pnand %p1572_p0, %p264_p2  ;;  %s277_s17 = sshll.u32 %s2044_s16, 4  ;;  %s278_s17 = int_to_ptr.vmem [resolvable:$true] %s277_s17 }
  0x15   : > { %s2405_s3 = sld [smem:[#allocation29_spill]]  ;;  %s2045_s22 = smov 128  }
  0x16   : > { %p1632_p4 = pneg %p2145_p3  ;;  %s2046_s23 = smov 8  }
  0x17   : > { %s2047_s24 = smov [#allocation10]   ;;  %s2406_s4 = sld [smem:[#allocation30_spill]] }
  0x18   : > { %s275_s14 = sshll.u32 %s2402_s2, 4  ;;  %p2153_p5 = pnand %p1632_p4, %p67_p1  ;;  %s276_s14 = int_to_ptr.hbm [resolvable:$true] %s275_s14 }
  0x19   : > { %s291_s25 = sshll.u32 %s2047_s24, 4  ;;  %s2048_s16 = smov [#allocation12]   ;;  %s292_s25 = int_to_ptr.vmem [resolvable:$true] %s291_s25 }
  0x1a   : > { %1635 = dma.hbm_to_vmem [thread:$0]  (!%p2153_p5), %s276_s14, 512, %s278_s17, [#allocation8], %s2045_s22, %s2045_s22, %s2046_s23  }
  0x1b   : > { %s289_s21 = sshll.u32 %s2405_s3, 4  ;;  %s305_s19 = sshll.u32 %s2048_s16, 4  ;;  %s290_s21 = int_to_ptr.hbm [resolvable:$true] %s289_s21  ;;  %s306_s19 = int_to_ptr.vmem [resolvable:$true] %s305_s19 }
  0x1c   : > { %1638 = dma.hbm_to_vmem [thread:$0]  (!%p2153_p5), %s290_s21, 512, %s292_s25, [#allocation11], %s2045_s22, %s2045_s22, %s2046_s23  }
  0x1d   : > { %s303_s13 = sshll.u32 %s2406_s4, 4  ;;  %s1571_s14 = sadd.s32 4294967294, %s2042_s10   ;;  %s304_s13 = int_to_ptr.hbm [resolvable:$true] %s303_s13 }
  0x1e   : > { %1641 = dma.hbm_to_vmem [thread:$0]  (!%p2153_p5), %s304_s13, 512, %s306_s19, [#allocation11], %s2045_s22, %s2045_s22, %s2046_s23  }
  0x1f   : > { %s44_s17 = sadd.s32 1, %s2038_s9  ;;  %s53_s20 = sadd.s32 1, %s2030_s29 }
  0x20   : > { %p46_p7 = scmp.ge.s32.totalorder %s44_s17, 2  ;;  %p60_p8 = scmp.ne.s32.totalorder %s2030_s29, %s2026_s28 }
  0x21   : > { %p61_p9 = scmp.eq.s32.totalorder %s2042_s10, 0  ;;  %p66_p10 = scmp.ne.s32.totalorder %s2026_s28, %s2022_s27 }
  0x22   : > { %s2423_s17 = smov (%p46_p7, %s44_s17), 0  ;;  %p223_p13 = scmp.eq.s32.totalorder %s2137_s11, 1 }
  0x23   : > { %2407 = sst [smem:[#allocation25_spill]] %s2423_s17  ;;  %p2180_p11 = por %p61_p9, %p60_p8 }
  0x24   : > { %p2186_p12 = por %p67_p1, %p66_p10  ;;  %s48_s22 = ssub.s32 %s2038_s9, %s2423_s17 }
  0x25   : > { %p51_p0 = scmp.eq.s32.totalorder %s48_s22, 0  ;;  %p229_p2 = scmp.eq.s32.totalorder %s1571_s14, 1 }
  0x26   : > { %p2193_p4 = por %p223_p13, %p60_p8  ;;  %p1659_p5 = scmp.lt.s32.totalorder %s2042_s10, 2 }
  0x27   : > { %s2199_s24 = scalar_select %p51_p0, %s2030_s29, %s53_s20  }
  0x28   : > { %p2201_p7 = por %p229_p2, %p66_p10  ;;  %s325_s26 = sand.u32 1, %s2030_s29  }
  0x29   : > { %2411 = sst [smem:[#allocation26_spill]] %s2199_s24  ;;  %s1577_s12 = sshll.u32 %s325_s26, 3 }
  0x2a   : > { %s2412_s25 = scalar_select %p2201_p7, 1, 0 }
  0x2b   : > { %s1578_s13 = sshll.u32 %s2038_s9, 3  ;;  %s329_s14 = scalar_lea.vmem [#allocation4], %s1577_s12 }
  0x2c   : > { %2413 = sst [smem:[#allocation27_spill]] %s2412_s25  ;;  %s334_s22 = scalar_lea.hbm %s2382_s0, %s1578_s13 }
  0x2d   : > { %s338_s2 = sshll.u32 %s329_s14, 4  ;;  %s336_s3 = sshll.u32 %s334_s22, 4  ;;  %s339_s2 = int_to_ptr.vmem [resolvable:$true] %s338_s2  ;;  %s337_s3 = int_to_ptr.hbm [resolvable:$true] %s336_s3 }
  0x2e   : > { %p1643_p8 = pnand %p1659_p5, %p2180_p11  ;;  %s353_s17 = scalar_lea.hbm %s2383_s1, %s1578_s13 }
  0x2f   : > { %s345_s24 = sand.u32 1, %s2042_s10   ;;  %s326_s25 = scalar_lea.sflag [#allocation5], %s325_s26 }
  0x30   : > { %1645 = dma.hbm_to_vmem [thread:$0]  (!%p1643_p8), %s337_s3, 128, %s339_s2, %s326_s25  }
  0x31   : > { %s355_s29 = sshll.u32 %s353_s17, 4  ;;  %s349_s9 = scalar_lea.vmem [#allocation7], %s1577_s12  ;;  %s356_s29 = int_to_ptr.hbm [resolvable:$true] %s355_s29 }
  0x32   : > { %s357_s27 = sshll.u32 %s349_s9, 4  ;;  %s346_s16 = scalar_lea.sflag [#allocation8], %s345_s24  ;;  %s358_s27 = int_to_ptr.vmem [resolvable:$true] %s357_s27 }
  0x33   : > { %1648 = dma.hbm_to_vmem [thread:$0]  (!%p1643_p8), %s356_s29, 128, %s358_s27, %s346_s16  }
  0x34   : > { %366 = sbr.rel (%p2145_p3) target bundleno = 1866 (0x74a), region = 48  ;;  %s2219_s21 = sand.u32 (!%p2145_p3), 1, %s2026_s28  }
  0x35   : > { %s2222_s4 = sshll.u32 (!%p2145_p3), %s2219_s21, 3  ;;  %s369_s2 = scalar_lea.sflag (!%p2145_p3), [#allocation5], %s2219_s21 }
  0x36   : > { %s372_s3 = scalar_lea.vmem (!%p2145_p3), [#allocation4], %s2222_s4 }
  0x39   : > { %1997 = dma.done.wait (%p2186_p12), %s369_s2, 128  }
  0x3a   : > { %1999 = vsyncadd (%p2186_p12), %s369_s2, 4294967168  ;;  %s378_s27 = sand.u32 1, %s2137_s11   ;;  %s382_s9 = scalar_lea.vmem [#allocation7], %s2222_s4 }
  0x3b   : > { %s379_s29 = scalar_lea.sflag [#allocation8], %s378_s27 }
  0x3c   : > { %2001 = dma.done.wait (%p2186_p12), %s379_s29, 128  }
  0x3d   : > { %2003 = vsyncadd (%p2186_p12), %s379_s29, 4294967168 }
  0x3e   : > { %2005 = dma.done.wait (%p67_p1), [#allocation8], 512  }
  0x3f   : > { %2007 = vsyncadd (%p67_p1), [#allocation8], 4294966784 }
  0x40   : > { %2009 = dma.done.wait (%p67_p1), [#allocation11], 1024  }
  0x41   : > { %2011 = vsyncadd (%p67_p1), [#allocation11], 4294966272  ;;  %v449_v0 = vld [vmem:[#allocation10 + $0x18] sm:$0xff]  ;;  %v448_v2 = vld [vmem:[#allocation10 + $0x10] sm:$0xff]  ;;  %vm450_vm0 = vcmask 261120   ;;  %s2049_s11 = smov 112  }
  0x42   : > { %v484_v1 = vld [vmem:[#allocation9 + $0x18] sm:$0xff]  ;;  %466 = vmatpush.msra.mxu0 %v449_v0  ;;  %v483_v3 = vld [vmem:[#allocation9 + $0x10] sm:$0xff]  ;;  %v447_v4 = vld [vmem:[#allocation10 + $0x8] sm:$0xff]  ;;  %s2050_s15 = smov 120   ;;  %s2051_s17 = smov 104   ;;  %vm667_vm1 = vcmask 64512  }
  0x43   : > { %501 = vmatpush.msra.mxu1 %v484_v1  ;;  %v482_v5 = vld [vmem:[#allocation9 + $0x8] sm:$0xff]  ;;  %v446_v6 = vld [vmem:[#allocation10] sm:$0xff]  ;;  %v445_v8 = vld [vmem:[%s382_s9] sm:$0xff]  ;;  %s2052_s18 = smov 96   ;;  %s1588_s24 = sshll.u32 %s2219_s21, 4  ;;  %vm804_vm2 = vcmask 60416  }
  0x44   : > { %467 = vmatpush.msra.mxu0 %v448_v2  ;;  %v481_v7 = vld [vmem:[#allocation9] sm:$0xff]  ;;  %s2275_s25 = scalar_lea.vmem [#allocation14], %s1588_s24  ;;  %vm1170_vm3 = vcmask 1047556   ;;  %s2055_s26 = smov 24   ;;  %vm1293_vm4 = vcmask 130048   ;;  %vm1295_vm5 = vcmask 195584  }
  0x45   : > { %502 = vmatpush.msra.mxu1 %v483_v3  ;;  %v2244_v9 = vld [vmem:[%s372_s3] sm:$0xff]  ;;  %s2056_s12 = smov 16   ;;  %s2057_s13 = smov 8  }
  0x46   : > { %468 = vmatpush.msra.mxu0 %v447_v4  ;;  %s1611_s19 = sshll.u32 %s2034_s30, 4  ;;  %s1398_s16 = sshll.u32 %s2275_s25, 4  ;;  %s1399_s16 = int_to_ptr.vmem [resolvable:$true] %s1398_s16 }
  0x47   : > { %503 = vmatpush.msra.mxu1 %v482_v5  ;;  %s1397_s20 = scalar_lea.hbm %s2390_s8, %s1611_s19  ;;  %s1370_s3 = scalar_lea.sflag [#allocation15], %s2219_s21 }
  0x48   : > { %469 = vmatpush.msra.mxu0 %v446_v6  ;;  %s1400_s2 = sshll.u32 %s1397_s20, 4  ;;  %s1401_s2 = int_to_ptr.hbm [resolvable:$true] %s1400_s2 }
  0x49   : > { %504 = vmatpush.msra.mxu1 %v481_v7  ;;  %1589 = vmatmul.msk.f32.vlgmr.msra.gmra.mxu0 %vm450_vm0, %v445_v8  ;;  %s1930_s27 = sshra.s32 %s1401_s2, 4  ;;  %s1931_s27 = int_to_ptr.hbm [resolvable:$true] %s1930_s27 }
  0x4a   : > { %1590 = vmatmul.msk.f32.vlgmr.msra.gmra.mxu1 %vm450_vm0, %v2244_v9  ;;  %s1932_s29 = scalar_lea.hbm %s1931_s27, 16  ;;  %p1937_p10 = scmp.lt.s32.totalorder %s1931_s27, %s2390_s8 }
  0x4b   : > { %p1933_p1 = scmp.ne.s32.totalorder %s1931_s27, %s1932_s29 }
  0x4d   : > { %p1934_p3 = pnand %p1933_p1, %p2193_p4 }
  0x4f   : > { %p1935_p9 = pneg %p1934_p3 }
  0xc6   : > { %v471_v10 = vpop.f32.mrf.mxu0 }
  0xc7   : > { %v506_v11 = vpop.f32.mrf.mxu1  ;;  %474 = vst.msk [vmem:[#allocation2] sm:$0xff] %vm450_vm0, %v471_v10 }
  0xc8   : > { %v509_v12 = vmul.f32 0.35355338, %v506_v11 }
  0xca   : > { %513 = vrot.lane.b32.xlu2 %v509_v12, %s2049_s11  ;;  %511 = vrot.lane.b32.xlu1 %v509_v12, %s2050_s15 }
  0xce   : > { %v517_v13 = vld [vmem:[#allocation2] sm:$0xff] }
  0xcf   : > { %519 = vrot.lane.b32.xlu0 %v517_v13, %s2050_s15 }
  0xd2   : > { %515 = vrot.lane.b32.xlu2 %v509_v12, %s2051_s17  ;;  %525 = vrot.lane.b32.xlu1 %v517_v13, %s2051_s17 }
  0xd7   : > { %522 = vrot.lane.b32.xlu0 %v517_v13, %s2049_s11 }
 0x124   : > { %v514_v21 = vpop.permute.xlu2 %513 }
 0x12c   : > { %v516_v27 = vpop.permute.xlu2 %515 }
 0x13c   : > { %v512_v14 = vpop.permute.xlu1 %511 }
 0x141   : > { %v520_v15 = vpop.permute.xlu0 %519 }
 0x142   : > { %v1730_v16 = vpack.i.bf16 %v520_v15, %v517_v13 }
 0x144   : > { %1731 = vxpose.xlu0.b32.start.end [1/1] (short) (narrow) %v1730_v16, 8  ;;  %v526_v17 = vpop.permute.xlu1 %525 }
 0x149   : > { %v523_v18 = vpop.permute.xlu0 %522 }
 0x14a   : > { %v1737_v19 = vpack.i.bf16 %v526_v17, %v523_v18 }
 0x14c   : > { %1738 = vxpose.xlu1.b32.start.end [1/1] (short) (narrow) %v1737_v19, 8 }
 0x1b2   : > { %476 = vrot.lane.b32.xlu0 %v471_v10, %s2052_s18 }
 0x1e8   : > { %v1732_v20 = vpop.trf.xlu0 }
 0x1e9   : > { %v1733_v22 = vunpack.i.l.bf16 %v1732_v20  ;;  %v1736_v23 = vunpack.i.h.bf16 %v1732_v20 }
 0x1eb   : > { %685 = vmatpush.msra.mxu2 %v1733_v22  ;;  %707 = vmatpush.msra.mxu3 %v1736_v23  ;;  %v2053_v23 = vmov 1983009808  }
 0x1ec   : > { %1591 = vmatmul.msk.f32.vlgmr.msra.gmra.mxu2 %vm667_vm1, %v509_v12  ;;  %1592 = vmatmul.msk.f32.vlgmr.msra.gmra.mxu3 %vm667_vm1, %v512_v14 }
 0x1f0   : > { %v1739_v24 = vpop.trf.xlu1 }
 0x1f1   : > { %v1740_v25 = vunpack.i.l.bf16 %v1739_v24  ;;  %v1743_v26 = vunpack.i.h.bf16 %v1739_v24  ;;  %v1175_v24 = vunpack.c.l.s4 %v2053_v23 }
 0x1f3   : > { %729 = vmatpush.msrb.mxu2 %v1740_v25  ;;  %751 = vmatpush.msrb.mxu3 %v1743_v26 }
 0x1f4   : > { %1593 = vmatmul.msk.f32.vlgmr.msrb.gmra.mxu2 %vm667_vm1, %v514_v21  ;;  %1594 = vmatmul.msk.f32.vlgmr.msrb.gmra.mxu3 %vm667_vm1, %v516_v27 }
 0x224   : > { %v477_v28 = vpop.permute.xlu0 %476 }
 0x225   : > { %479 = vst.msk [vmem:[#allocation3] sm:$0xff] %vm450_vm0, %v477_v28  ;;  %v1176_v28 = vunpack.c.0.s8 %v1175_v24 }
 0x22c   : > { %v528_v35 = vld [vmem:[#allocation3] sm:$0xff] }
 0x26f   : > { %v687_v29 = vpop.f32.mrf.mxu2  ;;  %v709_v30 = vpop.f32.mrf.mxu3 }
 0x270   : > { %v759_v31 = vsel %vm667_vm1, %v709_v30, -inf  ;;  %v756_v32 = vsel %vm667_vm1, %v687_v29, -inf }
 0x271   : > { %760 = vmax.xlane.f32.xlu1 %v759_v31  ;;  %757 = vmax.xlane.f32.xlu2 %v756_v32 }
 0x277   : > { %v731_v33 = vpop.f32.mrf.mxu2  ;;  %v753_v36 = vpop.f32.mrf.mxu3 }
 0x278   : > { %v762_v34 = vsel %vm667_vm1, %v731_v33, -inf  ;;  %v765_v37 = vsel %vm667_vm1, %v753_v36, -inf }
 0x279   : > { %763 = vmax.xlane.f32.xlu2 %v762_v34 }
 0x291   : > { %533 = vrot.lane.b32.xlu2 %v528_v35, %s2049_s11 }
 0x299   : > { %536 = vrot.lane.b32.xlu2 %v528_v35, %s2051_s17 }
 0x2c2   : > { %766 = vmax.xlane.f32.xlu2 %v765_v37 }
 0x2da   : > { %530 = vrot.lane.b32.xlu2 %v528_v35, %s2050_s15  ;;  %s1936_s15 = scalar_lea.hbm %s2390_s8, 32 }
 0x2db   : > { %p1938_p11 = scmp.lt.s32.totalorder %s1936_s15, %s1932_s29 }
 0x2dd   : > { %p1939_p12 = por %p1938_p11, %p1937_p10 }
 0x2df   : > { %p1940_p13 = pnand %p1939_p12, %p1935_p9 }
 0x2e4   : > { %v761_v38 = vpop.xlane.xlu1 %760  ;;  %v758_v39 = vpop.xlane.xlu2 %757 }
 0x2e5   : > { %v769_v40 = vsub.f32 %v709_v30, %v761_v38  ;;  %v768_v41 = vsub.f32 %v687_v29, %v758_v39 }
 0x2e7   : > { %v774_v42 = vmul.f32 1.442695, %v769_v40  ;;  %v772_v43 = vmul.f32 1.442695, %v768_v41 }
 0x2e9   : > { %1746 = vpow2.f32 %v774_v42 }
 0x2ea   : > { %1748 = vpow2.f32 %v772_v43 }
 0x2ec   : > { %v764_v44 = vpop.xlane.xlu2 %763 }
 0x2ed   : > { %v770_v48 = vsub.f32 %v731_v33, %v764_v44  ;;  %v2054_v33 = vmov 1934713408  }
 0x2ee   : > { %v1199_v34 = vunpack.c.l.s4 %v2054_v33  ;;  %v1298_v33 = vld [vmem:[#allocation12 + $0x8] sm:$0xff] }
 0x2ef   : > { %v1747_v45 = vpop.eup %1746  ;;  %v776_v50 = vmul.f32 1.442695, %v770_v48 }
 0x2f0   : > { %v1749_v46 = vpop.eup %1748  ;;  %v783_v47 = vsel %vm667_vm1, %v1747_v45, 0.0  ;;  %v1200_v38 = vunpack.c.0.s8 %v1199_v34  ;;  %v1297_v34 = vld [vmem:[#allocation12] sm:$0xff] }
 0x2f1   : > { %784 = vadd.xlane.f32.xlu1 %v783_v47  ;;  %v780_v49 = vsel %vm667_vm1, %v1749_v46, 0.0  ;;  %1750 = vpow2.f32 %v776_v50 }
 0x2f2   : > { %781 = vadd.xlane.f32.xlu0 %v780_v49 }
 0x2f4   : > { %v534_v53 = vpop.permute.xlu2 %533 }
 0x2f7   : > { %v1751_v51 = vpop.eup %1750 }
 0x2f8   : > { %v786_v52 = vsel %vm667_vm1, %v1751_v51, 0.0 }
 0x2fc   : > { %v537_v54 = vpop.permute.xlu2 %536 }
 0x303   : > { %787 = vadd.xlane.f32.xlu2 %v786_v52 }
 0x31b   : > { %809 = vxpose.xlu0.b32.start.end [1/1] (short) (narrow) %v528_v35, 8 }
 0x32b   : > { %873 = vxpose.xlu1.b32.start.end [1/1] (short) (narrow) %v534_v53, 8 }
 0x335   : > { %v767_v55 = vpop.xlane.xlu2 %766 }
 0x336   : > { %v771_v56 = vsub.f32 %v753_v36, %v767_v55 }
 0x338   : > { %v778_v57 = vmul.f32 1.442695, %v771_v56 }
 0x33a   : > { %1752 = vpow2.f32 %v778_v57 }
 0x33d   : > { %v531_v2 = vpop.permute.xlu2 %530 }
 0x340   : > { %v1753_v58 = vpop.eup %1752 }
 0x341   : > { %v789_v59 = vsel %vm667_vm1, %v1753_v58, 0.0 }
 0x342   : > { %790 = vadd.xlane.f32.xlu2 %v789_v59 }
 0x364   : > { %v785_v60 = vpop.xlane.xlu1 %784 }
 0x365   : > { %1754 = vrcp.f32 %v785_v60  ;;  %v782_v61 = vpop.xlane.xlu0 %781 }
 0x366   : > { %1756 = vrcp.f32 %v782_v61 }
 0x36b   : > { %v1755_v62 = vpop.eup %1754  ;;  %905 = vxpose.xlu2.b32.start.end [1/1] (short) (narrow) %v537_v54, 8 }
 0x36c   : > { %v1757_v63 = vpop.eup %1756  ;;  %v797_v0 = vmul.f32 %v1755_v62, %v1747_v45 }
 0x36d   : > { %v796_v1 = vmul.f32 %v1757_v63, %v1749_v46 }
 0x36e   : > { %v801_v3 = vpack.c.bf16 %v797_v0, %v797_v0  ;;  %1597 = vmatpush.xpose.msk.msrb.mxu1 %vm667_vm1, %v797_v0 }
 0x36f   : > { %v800_v4 = vpack.c.bf16 %v796_v1, %v796_v1  ;;  %1595 = vmatpush.xpose.msk.msrb.mxu0 %vm667_vm1, %v796_v1 }
 0x370   : > { %806 = vst.msk [vmem:[%s2275_s25 + $0x4] sm:$0xf] %vm804_vm2, %v801_v3 }
 0x371   : > { %805 = vst.msk [vmem:[%s2275_s25] sm:$0xf] %vm804_vm2, %v800_v4 }
 0x373   : > { %841 = vxpose.xlu2.b32.start.end [1/1] (short) (narrow) %v531_v2, 8 }
 0x376   : > { %v788_v5 = vpop.xlane.xlu2 %787 }
 0x377   : > { %1758 = vrcp.f32 %v788_v5 }
 0x37d   : > { %v1759_v6 = vpop.eup %1758 }
 0x37e   : > { %v798_v7 = vmul.f32 %v1759_v6, %v1751_v51 }
 0x380   : > { %v802_v8 = vpack.c.bf16 %v798_v7, %v798_v7  ;;  %1599 = vmatpush.xpose.msk.msra.mxu2 %vm667_vm1, %v798_v7 }
 0x382   : > { %807 = vst.msk [vmem:[%s2275_s25 + $0x8] sm:$0xf] %vm804_vm2, %v802_v8 }
 0x3b5   : > { %v791_v10 = vpop.xlane.xlu2 %790 }
 0x3b6   : > { %1760 = vrcp.f32 %v791_v10 }
 0x3bc   : > { %v1761_v11 = vpop.eup %1760 }
 0x3bd   : > { %v799_v12 = vmul.f32 %v1761_v11, %v1753_v58 }
 0x3bf   : > { %v803_v13 = vpack.c.bf16 %v799_v12, %v799_v12  ;;  %1601 = vmatpush.xpose.msk.msra.mxu3 %vm667_vm1, %v799_v12  ;;  %v825_v14 = vpop.trf.xlu0 }
 0x3c0   : > { %1596 = vmatmul.msk.f32.vlgmr.msrb.gmra.mxu0 %vm667_vm1, %v825_v14 }
 0x3c1   : > { %808 = vst.msk [vmem:[%s2275_s25 + $0xc] sm:$0xf] %vm804_vm2, %v803_v13 }
 0x3cf   : > { %v889_v15 = vpop.trf.xlu1 }
 0x3d0   : > { %1600 = vmatmul.msk.f32.vlgmr.msra.gmra.mxu2 %vm667_vm1, %v889_v15 }
 0x404   : > { %v921_v16 = vpop.trf.xlu2 }
 0x405   : > { %1602 = vmatmul.msk.f32.vlgmr.msra.gmra.mxu3 %vm667_vm1, %v921_v16 }
 0x40c   : > { %v857_v17 = vpop.trf.xlu2 }
 0x40d   : > { %1598 = vmatmul.msk.f32.vlgmr.msrb.gmra.mxu1 %vm667_vm1, %v857_v17 }
 0x43d   : > { %v960_v18 = vpop.f32.mrf.mxu0 }
 0x43e   : > { %1041 = vxpose.xlu1.b32.start.end [1/1] (short) (narrow) %v960_v18, 8 }
 0x453   : > { %v1012_v19 = vpop.f32.mrf.mxu2 }
 0x454   : > { %1105 = vxpose.xlu2.b32.start.end [1/1] (short) (narrow) %v1012_v19, 8 }
 0x488   : > { %v1038_v20 = vpop.f32.mrf.mxu3 }
 0x489   : > { %1137 = vxpose.xlu2.b32.start.end [1/1] (short) (narrow) %v1038_v20, 8 }
 0x48a   : > { %v986_v21 = vpop.f32.mrf.mxu1 }
 0x48b   : > { %1073 = vxpose.xlu1.b32.start.end [1/1] (short) (narrow) %v986_v21, 8 }
 0x4e2   : > { %v1057_v25 = vpop.trf.xlu1 }
 0x4e3   : > { %v1172_v27 = vrot.slane %v1057_v25, 4 }
 0x4ed   : > { %v1121_v22 = vpop.trf.xlu2 }
 0x4ee   : > { %v1169_v26 = vrot.slane %v1121_v22, 4  ;;  %v1173_v31 = vsel %vm1170_vm3, %v1121_v22, %v1172_v27 }
 0x4ef   : > { %v1181_v36 = vperm.slane %v1173_v31, %v1176_v28  ;;  %v1300_v31 = vld [vmem:[#allocation12 + $0x18] sm:$0xff] }
 0x4f0   : > { %v1171_v30 = vsel %vm1170_vm3, %v1169_v26, %v1057_v25  ;;  %1316 = vmatpush.msra.mxu0 %v1300_v31 }
 0x4f1   : > { %v1177_v35 = vperm.slane %v1171_v30, %v1176_v28  ;;  %v1208_v44 = vrot.slane %v1181_v36, 4 }
 0x4f3   : > { %v1196_v41 = vrot.slane %v1177_v35, 4 }
 0x522   : > { %v1153_v29 = vpop.trf.xlu2 }
 0x523   : > { %v1182_v32 = vrot.slane %v1153_v29, 4 }
 0x52f   : > { %v1089_v37 = vpop.trf.xlu1 }
 0x530   : > { %v1183_v39 = vsel %vm1170_vm3, %v1182_v32, %v1089_v37  ;;  %v1184_v40 = vrot.slane %v1089_v37, 4  ;;  %v1299_v32 = vld [vmem:[#allocation12 + $0x10] sm:$0xff] }
 0x531   : > { %v1189_v42 = vperm.slane %v1183_v39, %v1176_v28  ;;  %1317 = vmatpush.msra.mxu0 %v1299_v32 }
 0x532   : > { %v1185_v43 = vsel %vm1170_vm3, %v1153_v29, %v1184_v40 }
 0x533   : > { %v1193_v45 = vperm.slane %v1185_v43, %v1176_v28  ;;  %v1194_v46 = vrot.slane %v1189_v42, 4  ;;  %v1197_v47 = vsel %vm1170_vm3, %v1189_v42, %v1196_v41  ;;  %1318 = vmatpush.msra.mxu0 %v1298_v33 }
 0x534   : > { %v1205_v48 = vperm.slane %v1197_v47, %v1200_v38 }
 0x535   : > { %v1195_v49 = vsel %vm1170_vm3, %v1194_v46, %v1177_v35  ;;  %v1206_v50 = vrot.slane %v1193_v45, 4  ;;  %v1209_v51 = vsel %vm1170_vm3, %v1193_v45, %v1208_v44  ;;  %1319 = vmatpush.msra.mxu0 %v1297_v34  ;;  %v2058_v44 = vmov 32.0  }
 0x536   : > { %v1201_v52 = vperm.slane %v1195_v49, %v1200_v38  ;;  %v1217_v53 = vperm.slane %v1209_v51, %v1200_v38  ;;  %v1220_v54 = vrot.slane %v1205_v48, 4  ;;  %1762 = vrcp.f32 %v2058_v44 }
 0x537   : > { %v1207_v55 = vsel %vm1170_vm3, %v1206_v50, %v1181_v36 }
 0x538   : > { %v1213_v56 = vperm.slane %v1207_v55, %v1200_v38  ;;  %v1218_v57 = vrot.slane %v1201_v52, 4  ;;  %v1221_v58 = vsel %vm1170_vm3, 0.0, %v1220_v54  ;;  %v1224_v59 = vrot.slane %v1217_v53, 4 }
 0x539   : > { %v1226_v60 = vsel %vm1170_vm3, %v1220_v54, %v1201_v52  ;;  %v1231_v61 = vrot.slane %v1221_v58, 4 }
 0x53a   : > { %v1219_v62 = vsel %vm1170_vm3, 0.0, %v1218_v57  ;;  %v1222_v63 = vrot.slane %v1213_v56, 4  ;;  %v1225_v0 = vsel %vm1170_vm3, 0.0, %v1224_v59  ;;  %v1230_v1 = vperm.slane %v1226_v60, %v1176_v28 }
 0x53b   : > { %v1242_v2 = vrot.slane %v1225_v0, 4  ;;  %v1232_v3 = vsel %vm1170_vm3, %v1231_v61, %v1219_v62  ;;  %v1237_v4 = vsel %vm1170_vm3, %v1224_v59, %v1213_v56 }
 0x53c   : > { %v1223_v5 = vsel %vm1170_vm3, 0.0, %v1222_v63  ;;  %v1236_v6 = vperm.slane %v1232_v3, %v1176_v28  ;;  %v1241_v7 = vperm.slane %v1237_v4, %v1176_v28  ;;  %v1250_v8 = vrot.slane %v1230_v1, 4  ;;  %v1763_v45 = vpop.eup %1762 }
 0x53d   : > { %v1243_v10 = vsel %vm1170_vm3, %v1242_v2, %v1223_v5  ;;  %v1328_v46 = vmul.f32 32.0, %v1763_v45  ;;  %vm1332_vm6 = vweird.f32 %v1763_v45 }
 0x53e   : > { %v1247_v11 = vperm.slane %v1243_v10, %v1176_v28  ;;  %v1251_v12 = vsel %vm1170_vm3, %v1236_v6, %v1250_v8  ;;  %v1262_v13 = vrot.slane %v1241_v7, 4  ;;  %v1248_v14 = vrot.slane %v1236_v6, 4 }
 0x53f   : > { %v1259_v15 = vperm.slane %v1251_v12, %v1200_v38  ;;  %v1329_v47 = vsub.f32 1.0, %v1328_v46 }
 0x540   : > { %v1263_v16 = vsel %vm1170_vm3, %v1247_v11, %v1262_v13  ;;  %v1249_v17 = vsel %vm1170_vm3, %v1248_v14, %v1230_v1  ;;  %v1260_v18 = vrot.slane %v1247_v11, 4 }
 0x541   : > { %v1271_v19 = vperm.slane %v1263_v16, %v1200_v38  ;;  %v1278_v20 = vrot.slane %v1259_v15, 4  ;;  %v1255_v21 = vperm.slane %v1249_v17, %v1200_v38  ;;  %v1330_v48 = vmul.f32 %v1763_v45, %v1329_v47 }
 0x542   : > { %v1261_v22 = vsel %vm1170_vm3, %v1260_v18, %v1241_v7 }
 0x543   : > { %v1279_v23 = vsel %vm1170_vm3, %v1271_v19, %v1278_v20  ;;  %v1276_v24 = vrot.slane %v1271_v19, 4  ;;  %v1267_v25 = vperm.slane %v1261_v22, %v1200_v38  ;;  %v1274_v26 = vrot.slane %v1255_v21, 4 }
 0x544   : > { %1289 = vrot.lane.b32.xlu1 %v1279_v23, %s2055_s26  ;;  %v1331_v49 = vadd.f32 %v1763_v45, %v1330_v48 }
 0x545   : > { %v1277_v27 = vsel %vm1170_vm3, %v1276_v24, %v1259_v15  ;;  %v1272_v28 = vrot.slane %v1267_v25, 4  ;;  %v1275_v29 = vsel %vm1170_vm3, %v1267_v25, %v1274_v26 }
 0x546   : > { %1285 = vrot.lane.b32.xlu0 %v1277_v27, %s2056_s12  ;;  %1281 = vrot.lane.b32.xlu2 %v1275_v29, %s2057_s13  ;;  %v1333_v50 = vsel %vm1332_vm6, %v1763_v45, %v1331_v49 }
 0x547   : > { %v1273_v30 = vsel %vm1170_vm3, %v1272_v28, %v1255_v21 }
 0x5a0   : > { %v1282_v35 = vpop.permute.xlu2 %1281 }
 0x5a1   : > { %v1292_v36 = vsel %vm667_vm1, %v1273_v30, %v1282_v35 }
 0x5b6   : > { %v1290_v38 = vpop.permute.xlu1 %1289 }
 0x5b8   : > { %v1286_v37 = vpop.permute.xlu0 %1285 }
 0x5b9   : > { %v1294_v39 = vsel %vm1293_vm4, %v1292_v36, %v1286_v37 }
 0x5ba   : > { %v1296_v40 = vsel %vm1295_vm5, %v1294_v39, %v1290_v38 }
 0x5bb   : > { %1603 = vmatmul.msk.f32.vlgmr.msra.gmra.mxu0 %vm450_vm0, %v1296_v40 }
 0x638   : > { %v1321_v41 = vpop.f32.mrf.mxu0 }
 0x639   : > { %v1322_v42 = vadd.f32 %v1321_v41, %v2244_v9 }
 0x63b   : > { %v1324_v43 = vsel %vm450_vm0, %v1322_v42, 0.0 }
 0x63c   : > { %1325 = vadd.xlane.f32.xlu1 %v1324_v43 }
 0x6af   : > { %v1326_v51 = vpop.xlane.xlu1 %1325 }
 0x6b0   : > { %v1334_v52 = vmul.f32 %v1333_v50, %v1326_v51 }
 0x6b2   : > { %v1335_v53 = vsub.f32 %v1322_v42, %v1334_v52 }
 0x6b4   : > { %v1336_v9 = vmul.f32 %v1335_v53, %v1335_v53 }
 0x6b6   : > { %v1337_v54 = vsel %vm450_vm0, %v1336_v9, 0.0 }
 0x6b7   : > { %1338 = vadd.xlane.f32.xlu2 %v1337_v54 }
 0x6b8   : > { %1943 = shalt.err (!%p1940_p13)
}
 0x6b9   : > { %s2059_s24 = smov 64   ;;  %s2060_s25 = smov 4   ;;  %v1744_v0 = vld [vmem:[%s2387_s5] ss:$0 sm:$0xff] }
 0x6ba   : > { %1629 = dma.vmem_to_hbm [thread:$0]  (%p2193_p4), %s1399_s16, 256, %s1401_s2, %s1370_s3, %s2059_s24, %s2059_s24, %s2060_s25  }
 0x6bb   : > { %s1606_s26 = sshll.u32 %s2034_s30, 3  ;;  %v1745_v3 = vld [vmem:[%s2388_s6] ss:$0 sm:$0xff]  ;;  %s433_s30 = scalar_lea.vmem [#allocation13], %s2222_s4 }
 0x6bc   : > { %s1381_s14 = scalar_lea.hbm %s2389_s7, %s1606_s26  ;;  %s1383_s2 = sshll.u32 %s433_s30, 4  ;;  %s1384_s2 = int_to_ptr.vmem [resolvable:$true] %s1383_s2 }
 0x6bd   : > { %s1385_s3 = sshll.u32 %s1381_s14, 4  ;;  %s1365_s27 = scalar_lea.sflag [#allocation6], %s2219_s21  ;;  %s1386_s3 = int_to_ptr.hbm [resolvable:$true] %s1385_s3 }
 0x6be   : > { %s1958_s29 = sshra.s32 %s1386_s3, 4  ;;  %s1964_s4 = scalar_lea.hbm %s2389_s7, 16  ;;  %s1959_s29 = int_to_ptr.hbm [resolvable:$true] %s1958_s29 }
 0x6bf   : > { %s1960_s9 = scalar_lea.hbm %s1959_s29, 8  ;;  %p1965_p8 = scmp.lt.s32.totalorder %s1959_s29, %s2389_s7 }
 0x6c0   : > { %p1961_p0 = scmp.ne.s32.totalorder %s1959_s29, %s1960_s9  ;;  %p1966_p1 = scmp.lt.s32.totalorder %s1964_s4, %s1960_s9 }
 0x6c2   : > { %p1962_p2 = pnand %p1961_p0, %p2193_p4  ;;  %p1967_p3 = por %p1966_p1, %p1965_p8 }
 0x6c4   : > { %p1963_p5 = pneg %p1962_p2 }
 0x6c6   : > { %p1968_p9 = pnand %p1967_p3, %p1963_p5 }
 0x72a   : > { %v1339_v55 = vpop.xlane.xlu2 %1338 }
 0x72b   : > { %v1340_v56 = vmul.f32 %v1339_v55, %v1333_v50 }
 0x72d   : > { %v1341_v57 = vadd.f32 1e-06, %v1340_v56 }
 0x72f   : > { %1764 = vrsqrt.f32 %v1341_v57  ;;  %vm1348_vm8 = vweird.f32 %v1341_v57 }
 0x735   : > { %v1765_v58 = vpop.eup %1764 }
 0x736   : > { %v1343_v59 = vmul.f32 %v1765_v58, %v1341_v57  ;;  %vm1349_vm7 = vweird.f32 %v1765_v58 }
 0x737   : > { %vm1350_vm9 = vmor %vm1348_vm8, %vm1349_vm7 }
 0x738   : > { %v1344_v60 = vmul.f32 %v1765_v58, %v1343_v59 }
 0x73a   : > { %v1345_v61 = vmul.f32 0.5, %v1344_v60 }
 0x73c   : > { %v1346_v62 = vsub.f32 1.5, %v1345_v61 }
 0x73e   : > { %v1347_v63 = vmul.f32 %v1765_v58, %v1346_v62 }
 0x740   : > { %v1351_v1 = vsel %vm1350_vm9, %v1765_v58, %v1347_v63 }
 0x741   : > { %v1352_v2 = vmul.f32 %v1351_v1, %v1335_v53 }
 0x743   : > { %v1357_v4 = vmul.f32 %v1744_v0, %v1352_v2 }
 0x745   : > { %v1362_v5 = vadd.f32 %v1745_v3, %v1357_v4 }
 0x747   : > { %1363 = vst.msk [vmem:[%s433_s30] sm:$0xff] %vm450_vm0, %v1362_v5 }
 0x748   : > { %1971 = shalt.err (!%p1968_p9)
}
 0x749   : > { %1628 = dma.vmem_to_hbm [thread:$0]  (%p2193_p4), %s1384_s2, 128, %s1386_s3, %s1365_s27  }
 0x74a PF: > { %s2414_s21 = sld [smem:[#allocation22_spill]]  ;;  %p1650_p10 = pnand %p1576_p6, %p2201_p7 }
 0x74c   : > { %p1651_p11 = pneg %p1650_p10 }
 0x750   : > { %s1415_s25 = sand.u32 1, %s2414_s21  }
 0x751   : > { %s1416_s26 = scalar_lea.sflag [#allocation6], %s1415_s25 }
 0x752   : > { %2013 = dma.done.wait (%p1651_p11), %s1416_s26, 128  }
 0x753   : > { %2015 = vsyncadd (%p1651_p11), %s1416_s26, 4294967168  ;;  %s1426_s12 = scalar_lea.sflag [#allocation15], %s1415_s25 }
 0x754   : > { %2017 = dma.done.wait (%p1651_p11), %s1426_s12, 256  }
 0x755   : > { %2019 = vsyncadd (%p1651_p11), %s1426_s12, 4294967040  ;;  %s32_s10 = sadd.s32 1, %s2042_s10   ;;  %s2416_s23 = sld [smem:[#allocation23_spill]] }
 0x756   : > { %p29_p12 = scmp.ge.s32.totalorder %s32_s10, 4   ;;  %s2417_s29 = sld [smem:[#allocation26_spill]] }
 0x757   : > { %s2418_s30 = sld [smem:[#allocation24_spill]]  ;;  %s2420_s27 = smov %s2026_s28 }
 0x758   : > { %s2419_s9 = sld [smem:[#allocation25_spill]]  ;;  %31 = sbr.rel (!%p29_p12) target bundleno = 15 (0xf), region = 139 }
 0x75b   : > { %s2421_s28 = smov %s2416_s23 }
 0x75d   :  { %1432 = vsyncpa [#allocation5], 1 }
 0x75e   :  { %1434 = vsyncpa [#allocation5 + $0x1], 1 }
 0x75f   :  { %1435 = vsyncpa [#allocation8], 1 }
 0x760   :  { %1437 = vsyncpa [#allocation8 + $0x1], 1 }
 0x761   :  { %1438 = vsyncpa [#allocation11], 1 }
 0x762   :  { %1439 = vsyncpa [#allocation6], 1 }
 0x763   :  { %1441 = vsyncpa [#allocation6 + $0x1], 1 }
 0x764   :  { %1442 = vsyncpa [#allocation15], 1 }
 0x765   :  { %1444 = vsyncpa [#allocation15 + $0x1], 1 }

// kernel: tpu_custom_call.1
= control target key start
LH: loop header
LB: loop body
LE: loop exit
PB: predicated region body
PF: predicated region fallthrough
CT: control target
= control target key end

     0   :  { %s2382_s0 = inlined_call_operand.hbm [shape: f32[2,8,32], index: 0, kind: input, shape index: {}]   ;;  %s2383_s1 = inlined_call_operand.hbm [shape: f32[2,8,32], index: 1, kind: input, shape index: {}]   ;;  %s2384_s2 = inlined_call_operand.hbm [shape: f32[32,32], index: 2, kind: input, shape index: {}]   ;;  %s2385_s3 = inlined_call_operand.hbm [shape: f32[32,64], index: 3, kind: input, shape index: {}]   ;;  %s2386_s4 = inlined_call_operand.hbm [shape: f32[32,32], index: 4, kind: input, shape index: {}]   ;;  %s2387_s5 = inlined_call_operand.vmem [shape: f32[1,32], index: 5, kind: input, shape index: {}]   ;;  %s2388_s6 = inlined_call_operand.vmem [shape: f32[1,32], index: 6, kind: input, shape index: {}]   ;;  %s2389_s7 = inlined_call_operand.hbm [shape: f32[2,8,32], index: 7, kind: output, shape index: {0}]   ;;  %s2390_s8 = inlined_call_operand.hbm [shape: bf16[2,4,8,8], index: 8, kind: output, shape index: {1}]  }
   0x1   :  { %2396 = sst [smem:[#allocation28_spill]] %s2384_s2 }
   0x2   :  { %2397 = sst [smem:[#allocation29_spill]] %s2385_s3 }
   0x3   :  { %2398 = sst [smem:[#allocation30_spill]] %s2386_s4 }
   0x4   :  { %14 = vsyncpa [#allocation5], 0 }
   0x5   :  { %16 = vsyncpa [#allocation5 + $0x1], 0 }
   0x6   :  { %17 = vsyncpa [#allocation8], 0 }
   0x7   :  { %19 = vsyncpa [#allocation8 + $0x1], 0 }
   0x8   :  { %20 = vsyncpa [#allocation11], 0 }
   0x9   :  { %21 = vsyncpa [#allocation6], 0 }
   0xa   :  { %23 = vsyncpa [#allocation6 + $0x1], 0 }
   0xb   :  { %24 = vsyncpa [#allocation15], 0 }
   0xc   :  { %26 = vsyncpa [#allocation15 + $0x1], 0  ;;  %s2106_s27 = smov 0   ;;  %s2108_s28 = smov 0  }
   0xd   :  { %s2110_s29 = smov 0   ;;  %s2112_s30 = smov 0  }
   0xe   :  { %s2114_s9 = smov 0   ;;  %s2116_s10 = smov 0  }
   0xf LB: > { %2399 = sst [smem:[#allocation22_spill]] %s2022_s27  ;;  %s2137_s11 = sadd.s32 4294967295, %s2042_s10   ;;  %s2042_s10 = sphi %s2116_s10, %s32_s10   ;;  %s2038_s9 = sphi %s2114_s9, %s2419_s9   ;;  %s2034_s30 = sphi %s2112_s30, %s2418_s30   ;;  %s2030_s29 = sphi %s2110_s29, %s2417_s29   ;;  %s2026_s28 = sphi %s2108_s28, %s2421_s28   ;;  %s2022_s27 = sphi %s2106_s27, %s2420_s27  }
  0x10   : > { %2400 = sst [smem:[#allocation23_spill]] %s2030_s29  ;;  %p1572_p0 = scmp.ge.s32.totalorder %s2042_s10, 1 }
  0x11   : > { %2401 = sst [smem:[#allocation24_spill]] %s2038_s9  ;;  %p67_p1 = scmp.eq.s32.totalorder %s2137_s11, 0 }
  0x12   : > { %p264_p2 = scmp.lt.s32.totalorder %s2042_s10, 3  ;;  %s2402_s2 = sld [smem:[#allocation28_spill]] }
  0x13   : > { %s2044_s16 = smov [#allocation9]   ;;  %p1576_p6 = scmp.ge.s32.totalorder %s2042_s10, 2 }
  0x14   : > { %p2145_p3 = pnand %p1572_p0, %p264_p2  ;;  %s277_s17 = sshll.u32 %s2044_s16, 4  ;;  %s278_s17 = int_to_ptr.vmem [resolvable:$true] %s277_s17 }
  0x15   : > { %s2405_s3 = sld [smem:[#allocation29_spill]]  ;;  %s2045_s22 = smov 128  }
  0x16   : > { %p1632_p4 = pneg %p2145_p3  ;;  %s2046_s23 = smov 8  }
  0x17   : > { %s2047_s24 = smov [#allocation10]   ;;  %s2406_s4 = sld [smem:[#allocation30_spill]] }
  0x18   : > { %s275_s14 = sshll.u32 %s2402_s2, 4  ;;  %p2153_p5 = pnand %p1632_p4, %p67_p1  ;;  %s276_s14 = int_to_ptr.hbm [resolvable:$true] %s275_s14 }
  0x19   : > { %s291_s25 = sshll.u32 %s2047_s24, 4  ;;  %s2048_s16 = smov [#allocation12]   ;;  %s292_s25 = int_to_ptr.vmem [resolvable:$true] %s291_s25 }
  0x1a   : > { %1635 = dma.hbm_to_vmem [thread:$0]  (!%p2153_p5), %s276_s14, 512, %s278_s17, [#allocation8], %s2045_s22, %s2045_s22, %s2046_s23  }
  0x1b   : > { %s289_s21 = sshll.u32 %s2405_s3, 4  ;;  %s305_s19 = sshll.u32 %s2048_s16, 4  ;;  %s290_s21 = int_to_ptr.hbm [resolvable:$true] %s289_s21  ;;  %s306_s19 = int_to_ptr.vmem [resolvable:$true] %s305_s19 }
  0x1c   : > { %1638 = dma.hbm_to_vmem [thread:$0]  (!%p2153_p5), %s290_s21, 512, %s292_s25, [#allocation11], %s2045_s22, %s2045_s22, %s2046_s23  }
  0x1d   : > { %s303_s13 = sshll.u32 %s2406_s4, 4  ;;  %s1571_s14 = sadd.s32 4294967294, %s2042_s10   ;;  %s304_s13 = int_to_ptr.hbm [resolvable:$true] %s303_s13 }
  0x1e   : > { %1641 = dma.hbm_to_vmem [thread:$0]  (!%p2153_p5), %s304_s13, 512, %s306_s19, [#allocation11], %s2045_s22, %s2045_s22, %s2046_s23  }
  0x1f   : > { %s44_s17 = sadd.s32 1, %s2038_s9  ;;  %s53_s20 = sadd.s32 1, %s2030_s29 }
  0x20   : > { %p46_p7 = scmp.ge.s32.totalorder %s44_s17, 2  ;;  %p60_p8 = scmp.ne.s32.totalorder %s2030_s29, %s2026_s28 }
  0x21   : > { %p61_p9 = scmp.eq.s32.totalorder %s2042_s10, 0  ;;  %p66_p10 = scmp.ne.s32.totalorder %s2026_s28, %s2022_s27 }
  0x22   : > { %s2423_s17 = smov (%p46_p7, %s44_s17), 0  ;;  %p223_p13 = scmp.eq.s32.totalorder %s2137_s11, 1 }
  0x23   : > { %2407 = sst [smem:[#allocation25_spill]] %s2423_s17  ;;  %p2180_p11 = por %p61_p9, %p60_p8 }
  0x24   : > { %p2186_p12 = por %p67_p1, %p66_p10  ;;  %s48_s22 = ssub.s32 %s2038_s9, %s2423_s17 }
  0x25   : > { %p51_p0 = scmp.eq.s32.totalorder %s48_s22, 0  ;;  %p229_p2 = scmp.eq.s32.totalorder %s1571_s14, 1 }
  0x26   : > { %p2193_p4 = por %p223_p13, %p60_p8  ;;  %p1659_p5 = scmp.lt.s32.totalorder %s2042_s10, 2 }
  0x27   : > { %s2199_s24 = scalar_select %p51_p0, %s2030_s29, %s53_s20  }
  0x28   : > { %p2201_p7 = por %p229_p2, %p66_p10  ;;  %s325_s26 = sand.u32 1, %s2030_s29  }
  0x29   : > { %2411 = sst [smem:[#allocation26_spill]] %s2199_s24  ;;  %s1577_s12 = sshll.u32 %s325_s26, 3 }
  0x2a   : > { %s2412_s25 = scalar_select %p2201_p7, 1, 0 }
  0x2b   : > { %s1578_s13 = sshll.u32 %s2038_s9, 3  ;;  %s329_s14 = scalar_lea.vmem [#allocation4], %s1577_s12 }
  0x2c   : > { %2413 = sst [smem:[#allocation27_spill]] %s2412_s25  ;;  %s334_s22 = scalar_lea.hbm %s2382_s0, %s1578_s13 }
  0x2d   : > { %s338_s2 = sshll.u32 %s329_s14, 4  ;;  %s336_s3 = sshll.u32 %s334_s22, 4  ;;  %s339_s2 = int_to_ptr.vmem [resolvable:$true] %s338_s2  ;;  %s337_s3 = int_to_ptr.hbm [resolvable:$true] %s336_s3 }
  0x2e   : > { %p1643_p8 = pnand %p1659_p5, %p2180_p11  ;;  %s353_s17 = scalar_lea.hbm %s2383_s1, %s1578_s13 }
  0x2f   : > { %s345_s24 = sand.u32 1, %s2042_s10   ;;  %s326_s25 = scalar_lea.sflag [#allocation5], %s325_s26 }
  0x30   : > { %1645 = dma.hbm_to_vmem [thread:$0]  (!%p1643_p8), %s337_s3, 128, %s339_s2, %s326_s25  }
  0x31   : > { %s355_s29 = sshll.u32 %s353_s17, 4  ;;  %s349_s9 = scalar_lea.vmem [#allocation7], %s1577_s12  ;;  %s356_s29 = int_to_ptr.hbm [resolvable:$true] %s355_s29 }
  0x32   : > { %s357_s27 = sshll.u32 %s349_s9, 4  ;;  %s346_s16 = scalar_lea.sflag [#allocation8], %s345_s24  ;;  %s358_s27 = int_to_ptr.vmem [resolvable:$true] %s357_s27 }
  0x33   : > { %1648 = dma.hbm_to_vmem [thread:$0]  (!%p1643_p8), %s356_s29, 128, %s358_s27, %s346_s16  }
  0x34   : > { %366 = sbr.rel (%p2145_p3) target bundleno = 1866 (0x74a), region = 48  ;;  %s2219_s21 = sand.u32 (!%p2145_p3), 1, %s2026_s28  }
  0x35   : > { %s2222_s4 = sshll.u32 (!%p2145_p3), %s2219_s21, 3  ;;  %s369_s2 = scalar_lea.sflag (!%p2145_p3), [#allocation5], %s2219_s21 }
  0x36   : > { %s372_s3 = scalar_lea.vmem (!%p2145_p3), [#allocation4], %s2222_s4 }
  0x39   : > { %1997 = dma.done.wait (%p2186_p12), %s369_s2, 128  }
  0x3a   : > { %1999 = vsyncadd (%p2186_p12), %s369_s2, 4294967168  ;;  %s378_s27 = sand.u32 1, %s2137_s11   ;;  %s382_s9 = scalar_lea.vmem [#allocation7], %s2222_s4 }
  0x3b   : > { %s379_s29 = scalar_lea.sflag [#allocation8], %s378_s27 }
  0x3c   : > { %2001 = dma.done.wait (%p2186_p12), %s379_s29, 128  }
  0x3d   : > { %2003 = vsyncadd (%p2186_p12), %s379_s29, 4294967168 }
  0x3e   : > { %2005 = dma.done.wait (%p67_p1), [#allocation8], 512  }
  0x3f   : > { %2007 = vsyncadd (%p67_p1), [#allocation8], 4294966784 }
  0x40   : > { %2009 = dma.done.wait (%p67_p1), [#allocation11], 1024  }
  0x41   : > { %2011 = vsyncadd (%p67_p1), [#allocation11], 4294966272  ;;  %v449_v0 = vld [vmem:[#allocation10 + $0x18] sm:$0xff]  ;;  %v448_v2 = vld [vmem:[#allocation10 + $0x10] sm:$0xff]  ;;  %vm450_vm0 = vcmask 261120   ;;  %s2049_s11 = smov 112  }
  0x42   : > { %v484_v1 = vld [vmem:[#allocation9 + $0x18] sm:$0xff]  ;;  %466 = vmatpush.msra.mxu0 %v449_v0  ;;  %v483_v3 = vld [vmem:[#allocation9 + $0x10] sm:$0xff]  ;;  %v447_v4 = vld [vmem:[#allocation10 + $0x8] sm:$0xff]  ;;  %s2050_s15 = smov 120   ;;  %s2051_s17 = smov 104   ;;  %vm667_vm1 = vcmask 64512  }
  0x43   : > { %501 = vmatpush.msra.mxu1 %v484_v1  ;;  %v482_v5 = vld [vmem:[#allocation9 + $0x8] sm:$0xff]  ;;  %v446_v6 = vld [vmem:[#allocation10] sm:$0xff]  ;;  %v445_v8 = vld [vmem:[%s382_s9] sm:$0xff]  ;;  %s2052_s18 = smov 96   ;;  %s1588_s24 = sshll.u32 %s2219_s21, 4  ;;  %vm804_vm2 = vcmask 60416  }
  0x44   : > { %467 = vmatpush.msra.mxu0 %v448_v2  ;;  %v481_v7 = vld [vmem:[#allocation9] sm:$0xff]  ;;  %s2275_s25 = scalar_lea.vmem [#allocation14], %s1588_s24  ;;  %vm1170_vm3 = vcmask 1047556   ;;  %s2055_s26 = smov 24   ;;  %vm1293_vm4 = vcmask 130048   ;;  %vm1295_vm5 = vcmask 195584  }
  0x45   : > { %502 = vmatpush.msra.mxu1 %v483_v3  ;;  %v2244_v9 = vld [vmem:[%s372_s3] sm:$0xff]  ;;  %s2056_s12 = smov 16   ;;  %s2057_s13 = smov 8  }
  0x46   : > { %468 = vmatpush.msra.mxu0 %v447_v4  ;;  %s1611_s19 = sshll.u32 %s2034_s30, 4  ;;  %s1398_s16 = sshll.u32 %s2275_s25, 4  ;;  %s1399_s16 = int_to_ptr.vmem [resolvable:$true] %s1398_s16 }
  0x47   : > { %503 = vmatpush.msra.mxu1 %v482_v5  ;;  %s1397_s20 = scalar_lea.hbm %s2390_s8, %s1611_s19  ;;  %s1370_s3 = scalar_lea.sflag [#allocation15], %s2219_s21 }
  0x48   : > { %469 = vmatpush.msra.mxu0 %v446_v6  ;;  %s1400_s2 = sshll.u32 %s1397_s20, 4  ;;  %s1401_s2 = int_to_ptr.hbm [resolvable:$true] %s1400_s2 }
  0x49   : > { %504 = vmatpush.msra.mxu1 %v481_v7  ;;  %1589 = vmatmul.msk.f32.vlgmr.msra.gmra.mxu0 %vm450_vm0, %v445_v8  ;;  %s1930_s27 = sshra.s32 %s1401_s2, 4  ;;  %s1931_s27 = int_to_ptr.hbm [resolvable:$true] %s1930_s27 }
  0x4a   : > { %1590 = vmatmul.msk.f32.vlgmr.msra.gmra.mxu1 %vm450_vm0, %v2244_v9  ;;  %s1932_s29 = scalar_lea.hbm %s1931_s27, 16  ;;  %p1937_p10 = scmp.lt.s32.totalorder %s1931_s27, %s2390_s8 }
  0x4b   : > { %p1933_p1 = scmp.ne.s32.totalorder %s1931_s27, %s1932_s29 }
  0x4d   : > { %p1934_p3 = pnand %p1933_p1, %p2193_p4 }
  0x4f   : > { %p1935_p9 = pneg %p1934_p3 }
  0xc6   : > { %v471_v10 = vpop.f32.mrf.mxu0 }
  0xc7   : > { %v506_v11 = vpop.f32.mrf.mxu1  ;;  %474 = vst.msk [vmem:[#allocation2] sm:$0xff] %vm450_vm0, %v471_v10 }
  0xc8   : > { %v509_v12 = vmul.f32 0.35355338, %v506_v11 }
  0xca   : > { %513 = vrot.lane.b32.xlu2 %v509_v12, %s2049_s11  ;;  %511 = vrot.lane.b32.xlu1 %v509_v12, %s2050_s15 }
  0xce   : > { %v517_v13 = vld [vmem:[#allocation2] sm:$0xff] }
  0xcf   : > { %519 = vrot.lane.b32.xlu0 %v517_v13, %s2050_s15 }
  0xd2   : > { %515 = vrot.lane.b32.xlu2 %v509_v12, %s2051_s17  ;;  %525 = vrot.lane.b32.xlu1 %v517_v13, %s2051_s17 }
  0xd7   : > { %522 = vrot.lane.b32.xlu0 %v517_v13, %s2049_s11 }
 0x124   : > { %v514_v21 = vpop.permute.xlu2 %513 }
 0x12c   : > { %v516_v27 = vpop.permute.xlu2 %515 }
 0x13c   : > { %v512_v14 = vpop.permute.xlu1 %511 }
 0x141   : > { %v520_v15 = vpop.permute.xlu0 %519 }
 0x142   : > { %v1730_v16 = vpack.i.bf16 %v520_v15, %v517_v13 }
 0x144   : > { %1731 = vxpose.xlu0.b32.start.end [1/1] (short) (narrow) %v1730_v16, 8  ;;  %v526_v17 = vpop.permute.xlu1 %525 }
 0x149   : > { %v523_v18 = vpop.permute.xlu0 %522 }
 0x14a   : > { %v1737_v19 = vpack.i.bf16 %v526_v17, %v523_v18 }
 0x14c   : > { %1738 = vxpose.xlu1.b32.start.end [1/1] (short) (narrow) %v1737_v19, 8 }
 0x1b2   : > { %476 = vrot.lane.b32.xlu0 %v471_v10, %s2052_s18 }
 0x1e8   : > { %v1732_v20 = vpop.trf.xlu0 }
 0x1e9   : > { %v1733_v22 = vunpack.i.l.bf16 %v1732_v20  ;;  %v1736_v23 = vunpack.i.h.bf16 %v1732_v20 }
 0x1eb   : > { %685 = vmatpush.msra.mxu2 %v1733_v22  ;;  %707 = vmatpush.msra.mxu3 %v1736_v23  ;;  %v2053_v23 = vmov 1983009808  }
 0x1ec   : > { %1591 = vmatmul.msk.f32.vlgmr.msra.gmra.mxu2 %vm667_vm1, %v509_v12  ;;  %1592 = vmatmul.msk.f32.vlgmr.msra.gmra.mxu3 %vm667_vm1, %v512_v14 }
 0x1f0   : > { %v1739_v24 = vpop.trf.xlu1 }
 0x1f1   : > { %v1740_v25 = vunpack.i.l.bf16 %v1739_v24  ;;  %v1743_v26 = vunpack.i.h.bf16 %v1739_v24  ;;  %v1175_v24 = vunpack.c.l.s4 %v2053_v23 }
 0x1f3   : > { %729 = vmatpush.msrb.mxu2 %v1740_v25  ;;  %751 = vmatpush.msrb.mxu3 %v1743_v26 }
 0x1f4   : > { %1593 = vmatmul.msk.f32.vlgmr.msrb.gmra.mxu2 %vm667_vm1, %v514_v21  ;;  %1594 = vmatmul.msk.f32.vlgmr.msrb.gmra.mxu3 %vm667_vm1, %v516_v27 }
 0x224   : > { %v477_v28 = vpop.permute.xlu0 %476 }
 0x225   : > { %479 = vst.msk [vmem:[#allocation3] sm:$0xff] %vm450_vm0, %v477_v28  ;;  %v1176_v28 = vunpack.c.0.s8 %v1175_v24 }
 0x22c   : > { %v528_v35 = vld [vmem:[#allocation3] sm:$0xff] }
 0x26f   : > { %v687_v29 = vpop.f32.mrf.mxu2  ;;  %v709_v30 = vpop.f32.mrf.mxu3 }
 0x270   : > { %v759_v31 = vsel %vm667_vm1, %v709_v30, -inf  ;;  %v756_v32 = vsel %vm667_vm1, %v687_v29, -inf }
 0x271   : > { %760 = vmax.xlane.f32.xlu1 %v759_v31  ;;  %757 = vmax.xlane.f32.xlu2 %v756_v32 }
 0x277   : > { %v731_v33 = vpop.f32.mrf.mxu2  ;;  %v753_v36 = vpop.f32.mrf.mxu3 }
 0x278   : > { %v762_v34 = vsel %vm667_vm1, %v731_v33, -inf  ;;  %v765_v37 = vsel %vm667_vm1, %v753_v36, -inf }
 0x279   : > { %763 = vmax.xlane.f32.xlu2 %v762_v34 }
 0x291   : > { %533 = vrot.lane.b32.xlu2 %v528_v35, %s2049_s11 }
 0x299   : > { %536 = vrot.lane.b32.xlu2 %v528_v35, %s2051_s17 }
 0x2c2   : > { %766 = vmax.xlane.f32.xlu2 %v765_v37 }
 0x2da   : > { %530 = vrot.lane.b32.xlu2 %v528_v35, %s2050_s15  ;;  %s1936_s15 = scalar_lea.hbm %s2390_s8, 32 }
 0x2db   : > { %p1938_p11 = scmp.lt.s32.totalorder %s1936_s15, %s1932_s29 }
 0x2dd   : > { %p1939_p12 = por %p1938_p11, %p1937_p10 }
 0x2df   : > { %p1940_p13 = pnand %p1939_p12, %p1935_p9 }
 0x2e4   : > { %v761_v38 = vpop.xlane.xlu1 %760  ;;  %v758_v39 = vpop.xlane.xlu2 %757 }
 0x2e5   : > { %v769_v40 = vsub.f32 %v709_v30, %v761_v38  ;;  %v768_v41 = vsub.f32 %v687_v29, %v758_v39 }
 0x2e7   : > { %v774_v42 = vmul.f32 1.442695, %v769_v40  ;;  %v772_v43 = vmul.f32 1.442695, %v768_v41 }
 0x2e9   : > { %1746 = vpow2.f32 %v774_v42 }
 0x2ea   : > { %1748 = vpow2.f32 %v772_v43 }
 0x2ec   : > { %v764_v44 = vpop.xlane.xlu2 %763 }
 0x2ed   : > { %v770_v48 = vsub.f32 %v731_v33, %v764_v44  ;;  %v2054_v33 = vmov 1934713408  }
 0x2ee   : > { %v1199_v34 = vunpack.c.l.s4 %v2054_v33  ;;  %v1298_v33 = vld [vmem:[#allocation12 + $0x8] sm:$0xff] }
 0x2ef   : > { %v1747_v45 = vpop.eup %1746  ;;  %v776_v50 = vmul.f32 1.442695, %v770_v48 }
 0x2f0   : > { %v1749_v46 = vpop.eup %1748  ;;  %v783_v47 = vsel %vm667_vm1, %v1747_v45, 0.0  ;;  %v1200_v38 = vunpack.c.0.s8 %v1199_v34  ;;  %v1297_v34 = vld [vmem:[#allocation12] sm:$0xff] }
 0x2f1   : > { %784 = vadd.xlane.f32.xlu1 %v783_v47  ;;  %v780_v49 = vsel %vm667_vm1, %v1749_v46, 0.0  ;;  %1750 = vpow2.f32 %v776_v50 }
 0x2f2   : > { %781 = vadd.xlane.f32.xlu0 %v780_v49 }
 0x2f4   : > { %v534_v53 = vpop.permute.xlu2 %533 }
 0x2f7   : > { %v1751_v51 = vpop.eup %1750 }
 0x2f8   : > { %v786_v52 = vsel %vm667_vm1, %v1751_v51, 0.0 }
 0x2fc   : > { %v537_v54 = vpop.permute.xlu2 %536 }
 0x303   : > { %787 = vadd.xlane.f32.xlu2 %v786_v52 }
 0x31b   : > { %809 = vxpose.xlu0.b32.start.end [1/1] (short) (narrow) %v528_v35, 8 }
 0x32b   : > { %873 = vxpose.xlu1.b32.start.end [1/1] (short) (narrow) %v534_v53, 8 }
 0x335   : > { %v767_v55 = vpop.xlane.xlu2 %766 }
 0x336   : > { %v771_v56 = vsub.f32 %v753_v36, %v767_v55 }
 0x338   : > { %v778_v57 = vmul.f32 1.442695, %v771_v56 }
 0x33a   : > { %1752 = vpow2.f32 %v778_v57 }
 0x33d   : > { %v531_v2 = vpop.permute.xlu2 %530 }
 0x340   : > { %v1753_v58 = vpop.eup %1752 }
 0x341   : > { %v789_v59 = vsel %vm667_vm1, %v1753_v58, 0.0 }
 0x342   : > { %790 = vadd.xlane.f32.xlu2 %v789_v59 }
 0x364   : > { %v785_v60 = vpop.xlane.xlu1 %784 }
 0x365   : > { %1754 = vrcp.f32 %v785_v60  ;;  %v782_v61 = vpop.xlane.xlu0 %781 }
 0x366   : > { %1756 = vrcp.f32 %v782_v61 }
 0x36b   : > { %v1755_v62 = vpop.eup %1754  ;;  %905 = vxpose.xlu2.b32.start.end [1/1] (short) (narrow) %v537_v54, 8 }
 0x36c   : > { %v1757_v63 = vpop.eup %1756  ;;  %v797_v0 = vmul.f32 %v1755_v62, %v1747_v45 }
 0x36d   : > { %v796_v1 = vmul.f32 %v1757_v63, %v1749_v46 }
 0x36e   : > { %v801_v3 = vpack.c.bf16 %v797_v0, %v797_v0  ;;  %1597 = vmatpush.xpose.msk.msrb.mxu1 %vm667_vm1, %v797_v0 }
 0x36f   : > { %v800_v4 = vpack.c.bf16 %v796_v1, %v796_v1  ;;  %1595 = vmatpush.xpose.msk.msrb.mxu0 %vm667_vm1, %v796_v1 }
 0x370   : > { %806 = vst.msk [vmem:[%s2275_s25 + $0x4] sm:$0xf] %vm804_vm2, %v801_v3 }
 0x371   : > { %805 = vst.msk [vmem:[%s2275_s25] sm:$0xf] %vm804_vm2, %v800_v4 }
 0x373   : > { %841 = vxpose.xlu2.b32.start.end [1/1] (short) (narrow) %v531_v2, 8 }
 0x376   : > { %v788_v5 = vpop.xlane.xlu2 %787 }
 0x377   : > { %1758 = vrcp.f32 %v788_v5 }
 0x37d   : > { %v1759_v6 = vpop.eup %1758 }
 0x37e   : > { %v798_v7 = vmul.f32 %v1759_v6, %v1751_v51 }
 0x380   : > { %v802_v8 = vpack.c.bf16 %v798_v7, %v798_v7  ;;  %1599 = vmatpush.xpose.msk.msra.mxu2 %vm667_vm1, %v798_v7 }
 0x382   : > { %807 = vst.msk [vmem:[%s2275_s25 + $0x8] sm:$0xf] %vm804_vm2, %v802_v8 }
 0x3b5   : > { %v791_v10 = vpop.xlane.xlu2 %790 }
 0x3b6   : > { %1760 = vrcp.f32 %v791_v10 }
 0x3bc   : > { %v1761_v11 = vpop.eup %1760 }
 0x3bd   : > { %v799_v12 = vmul.f32 %v1761_v11, %v1753_v58 }
 0x3bf   : > { %v803_v13 = vpack.c.bf16 %v799_v12, %v799_v12  ;;  %1601 = vmatpush.xpose.msk.msra.mxu3 %vm667_vm1, %v799_v12  ;;  %v825_v14 = vpop.trf.xlu0 }
 0x3c0   : > { %1596 = vmatmul.msk.f32.vlgmr.msrb.gmra.mxu0 %vm667_vm1, %v825_v14 }
 0x3c1   : > { %808 = vst.msk [vmem:[%s2275_s25 + $0xc] sm:$0xf] %vm804_vm2, %v803_v13 }
 0x3cf   : > { %v889_v15 = vpop.trf.xlu1 }
 0x3d0   : > { %1600 = vmatmul.msk.f32.vlgmr.msra.gmra.mxu2 %vm667_vm1, %v889_v15 }
 0x404   : > { %v921_v16 = vpop.trf.xlu2 }
 0x405   : > { %1602 = vmatmul.msk.f32.vlgmr.msra.gmra.mxu3 %vm667_vm1, %v921_v16 }
 0x40c   : > { %v857_v17 = vpop.trf.xlu2 }
 0x40d   : > { %1598 = vmatmul.msk.f32.vlgmr.msrb.gmra.mxu1 %vm667_vm1, %v857_v17 }
 0x43d   : > { %v960_v18 = vpop.f32.mrf.mxu0 }
 0x43e   : > { %1041 = vxpose.xlu1.b32.start.end [1/1] (short) (narrow) %v960_v18, 8 }
 0x453   : > { %v1012_v19 = vpop.f32.mrf.mxu2 }
 0x454   : > { %1105 = vxpose.xlu2.b32.start.end [1/1] (short) (narrow) %v1012_v19, 8 }
 0x488   : > { %v1038_v20 = vpop.f32.mrf.mxu3 }
 0x489   : > { %1137 = vxpose.xlu2.b32.start.end [1/1] (short) (narrow) %v1038_v20, 8 }
 0x48a   : > { %v986_v21 = vpop.f32.mrf.mxu1 }
 0x48b   : > { %1073 = vxpose.xlu1.b32.start.end [1/1] (short) (narrow) %v986_v21, 8 }
 0x4e2   : > { %v1057_v25 = vpop.trf.xlu1 }
 0x4e3   : > { %v1172_v27 = vrot.slane %v1057_v25, 4 }
 0x4ed   : > { %v1121_v22 = vpop.trf.xlu2 }
 0x4ee   : > { %v1169_v26 = vrot.slane %v1121_v22, 4  ;;  %v1173_v31 = vsel %vm1170_vm3, %v1121_v22, %v1172_v27 }
 0x4ef   : > { %v1181_v36 = vperm.slane %v1173_v31, %v1176_v28  ;;  %v1300_v31 = vld [vmem:[#allocation12 + $0x18] sm:$0xff] }
 0x4f0   : > { %v1171_v30 = vsel %vm1170_vm3, %v1169_v26, %v1057_v25  ;;  %1316 = vmatpush.msra.mxu0 %v1300_v31 }
 0x4f1   : > { %v1177_v35 = vperm.slane %v1171_v30, %v1176_v28  ;;  %v1208_v44 = vrot.slane %v1181_v36, 4 }
 0x4f3   : > { %v1196_v41 = vrot.slane %v1177_v35, 4 }
 0x522   : > { %v1153_v29 = vpop.trf.xlu2 }
 0x523   : > { %v1182_v32 = vrot.slane %v1153_v29, 4 }
 0x52f   : > { %v1089_v37 = vpop.trf.xlu1 }
 0x530   : > { %v1183_v39 = vsel %vm1170_vm3, %v1182_v32, %v1089_v37  ;;  %v1184_v40 = vrot.slane %v1089_v37, 4  ;;  %v1299_v32 = vld [vmem:[#allocation12 + $0x10] sm:$0xff] }
 0x531   : > { %v1189_v42 = vperm.slane %v1183_v39, %v1176_v28  ;;  %1317 = vmatpush.msra.mxu0 %v1299_v32 }
 0x532   : > { %v1185_v43 = vsel %vm1170_vm3, %v1153_v29, %v1184_v40 }
 0x533   : > { %v1193_v45 = vperm.slane %v1185_v43, %v1176_v28  ;;  %v1194_v46 = vrot.slane %v1189_v42, 4  ;;  %v1197_v47 = vsel %vm1170_vm3, %v1189_v42, %v1196_v41  ;;  %1318 = vmatpush.msra.mxu0 %v1298_v33 }
 0x534   : > { %v1205_v48 = vperm.slane %v1197_v47, %v1200_v38 }
 0x535   : > { %v1195_v49 = vsel %vm1170_vm3, %v1194_v46, %v1177_v35  ;;  %v1206_v50 = vrot.slane %v1193_v45, 4  ;;  %v1209_v51 = vsel %vm1170_vm3, %v1193_v45, %v1208_v44  ;;  %1319 = vmatpush.msra.mxu0 %v1297_v34  ;;  %v2058_v44 = vmov 32.0  }
 0x536   : > { %v1201_v52 = vperm.slane %v1195_v49, %v1200_v38  ;;  %v1217_v53 = vperm.slane %v1209_v51, %v1200_v38  ;;  %v1220_v54 = vrot.slane %v1205_v48, 4  ;;  %1762 = vrcp.f32 %v2058_v44 }
 0x537   : > { %v1207_v55 = vsel %vm1170_vm3, %v1206_v50, %v1181_v36 }
 0x538   : > { %v1213_v56 = vperm.slane %v1207_v55, %v1200_v38  ;;  %v1218_v57 = vrot.slane %v1201_v52, 4  ;;  %v1221_v58 = vsel %vm1170_vm3, 0.0, %v1220_v54  ;;  %v1224_v59 = vrot.slane %v1217_v53, 4 }
 0x539   : > { %v1226_v60 = vsel %vm1170_vm3, %v1220_v54, %v1201_v52  ;;  %v1231_v61 = vrot.slane %v1221_v58, 4 }
 0x53a   : > { %v1219_v62 = vsel %vm1170_vm3, 0.0, %v1218_v57  ;;  %v1222_v63 = vrot.slane %v1213_v56, 4  ;;  %v1225_v0 = vsel %vm1170_vm3, 0.0, %v1224_v59  ;;  %v1230_v1 = vperm.slane %v1226_v60, %v1176_v28 }
 0x53b   : > { %v1242_v2 = vrot.slane %v1225_v0, 4  ;;  %v1232_v3 = vsel %vm1170_vm3, %v1231_v61, %v1219_v62  ;;  %v1237_v4 = vsel %vm1170_vm3, %v1224_v59, %v1213_v56 }
 0x53c   : > { %v1223_v5 = vsel %vm1170_vm3, 0.0, %v1222_v63  ;;  %v1236_v6 = vperm.slane %v1232_v3, %v1176_v28  ;;  %v1241_v7 = vperm.slane %v1237_v4, %v1176_v28  ;;  %v1250_v8 = vrot.slane %v1230_v1, 4  ;;  %v1763_v45 = vpop.eup %1762 }
 0x53d   : > { %v1243_v10 = vsel %vm1170_vm3, %v1242_v2, %v1223_v5  ;;  %v1328_v46 = vmul.f32 32.0, %v1763_v45  ;;  %vm1332_vm6 = vweird.f32 %v1763_v45 }
 0x53e   : > { %v1247_v11 = vperm.slane %v1243_v10, %v1176_v28  ;;  %v1251_v12 = vsel %vm1170_vm3, %v1236_v6, %v1250_v8  ;;  %v1262_v13 = vrot.slane %v1241_v7, 4  ;;  %v1248_v14 = vrot.slane %v1236_v6, 4 }
 0x53f   : > { %v1259_v15 = vperm.slane %v1251_v12, %v1200_v38  ;;  %v1329_v47 = vsub.f32 1.0, %v1328_v46 }
 0x540   : > { %v1263_v16 = vsel %vm1170_vm3, %v1247_v11, %v1262_v13  ;;  %v1249_v17 = vsel %vm1170_vm3, %v1248_v14, %v1230_v1  ;;  %v1260_v18 = vrot.slane %v1247_v11, 4 }
 0x541   : > { %v1271_v19 = vperm.slane %v1263_v16, %v1200_v38  ;;  %v1278_v20 = vrot.slane %v1259_v15, 4  ;;  %v1255_v21 = vperm.slane %v1249_v17, %v1200_v38  ;;  %v1330_v48 = vmul.f32 %v1763_v45, %v1329_v47 }
 0x542   : > { %v1261_v22 = vsel %vm1170_vm3, %v1260_v18, %v1241_v7 }
 0x543   : > { %v1279_v23 = vsel %vm1170_vm3, %v1271_v19, %v1278_v20  ;;  %v1276_v24 = vrot.slane %v1271_v19, 4  ;;  %v1267_v25 = vperm.slane %v1261_v22, %v1200_v38  ;;  %v1274_v26 = vrot.slane %v1255_v21, 4 }
 0x544   : > { %1289 = vrot.lane.b32.xlu1 %v1279_v23, %s2055_s26  ;;  %v1331_v49 = vadd.f32 %v1763_v45, %v1330_v48 }
 0x545   : > { %v1277_v27 = vsel %vm1170_vm3, %v1276_v24, %v1259_v15  ;;  %v1272_v28 = vrot.slane %v1267_v25, 4  ;;  %v1275_v29 = vsel %vm1170_vm3, %v1267_v25, %v1274_v26 }
 0x546   : > { %1285 = vrot.lane.b32.xlu0 %v1277_v27, %s2056_s12  ;;  %1281 = vrot.lane.b32.xlu2 %v1275_v29, %s2057_s13  ;;  %v1333_v50 = vsel %vm1332_vm6, %v1763_v45, %v1331_v49 }
 0x547   : > { %v1273_v30 = vsel %vm1170_vm3, %v1272_v28, %v1255_v21 }
 0x5a0   : > { %v1282_v35 = vpop.permute.xlu2 %1281 }
 0x5a1   : > { %v1292_v36 = vsel %vm667_vm1, %v1273_v30, %v1282_v35 }
 0x5b6   : > { %v1290_v38 = vpop.permute.xlu1 %1289 }
 0x5b8   : > { %v1286_v37 = vpop.permute.xlu0 %1285 }
 0x5b9   : > { %v1294_v39 = vsel %vm1293_vm4, %v1292_v36, %v1286_v37 }
 0x5ba   : > { %v1296_v40 = vsel %vm1295_vm5, %v1294_v39, %v1290_v38 }
 0x5bb   : > { %1603 = vmatmul.msk.f32.vlgmr.msra.gmra.mxu0 %vm450_vm0, %v1296_v40 }
 0x638   : > { %v1321_v41 = vpop.f32.mrf.mxu0 }
 0x639   : > { %v1322_v42 = vadd.f32 %v1321_v41, %v2244_v9 }
 0x63b   : > { %v1324_v43 = vsel %vm450_vm0, %v1322_v42, 0.0 }
 0x63c   : > { %1325 = vadd.xlane.f32.xlu1 %v1324_v43 }
 0x6af   : > { %v1326_v51 = vpop.xlane.xlu1 %1325 }
 0x6b0   : > { %v1334_v52 = vmul.f32 %v1333_v50, %v1326_v51 }
 0x6b2   : > { %v1335_v53 = vsub.f32 %v1322_v42, %v1334_v52 }
 0x6b4   : > { %v1336_v9 = vmul.f32 %v1335_v53, %v1335_v53 }
 0x6b6   : > { %v1337_v54 = vsel %vm450_vm0, %v1336_v9, 0.0 }
 0x6b7   : > { %1338 = vadd.xlane.f32.xlu2 %v1337_v54 }
 0x6b8   : > { %1943 = shalt.err (!%p1940_p13)
}
 0x6b9   : > { %s2059_s24 = smov 64   ;;  %s2060_s25 = smov 4   ;;  %v1744_v0 = vld [vmem:[%s2387_s5] ss:$0 sm:$0xff] }
 0x6ba   : > { %1629 = dma.vmem_to_hbm [thread:$0]  (%p2193_p4), %s1399_s16, 256, %s1401_s2, %s1370_s3, %s2059_s24, %s2059_s24, %s2060_s25  }
 0x6bb   : > { %s1606_s26 = sshll.u32 %s2034_s30, 3  ;;  %v1745_v3 = vld [vmem:[%s2388_s6] ss:$0 sm:$0xff]  ;;  %s433_s30 = scalar_lea.vmem [#allocation13], %s2222_s4 }
 0x6bc   : > { %s1381_s14 = scalar_lea.hbm %s2389_s7, %s1606_s26  ;;  %s1383_s2 = sshll.u32 %s433_s30, 4  ;;  %s1384_s2 = int_to_ptr.vmem [resolvable:$true] %s1383_s2 }
 0x6bd   : > { %s1385_s3 = sshll.u32 %s1381_s14, 4  ;;  %s1365_s27 = scalar_lea.sflag [#allocation6], %s2219_s21  ;;  %s1386_s3 = int_to_ptr.hbm [resolvable:$true] %s1385_s3 }
 0x6be   : > { %s1958_s29 = sshra.s32 %s1386_s3, 4  ;;  %s1964_s4 = scalar_lea.hbm %s2389_s7, 16  ;;  %s1959_s29 = int_to_ptr.hbm [resolvable:$true] %s1958_s29 }
 0x6bf   : > { %s1960_s9 = scalar_lea.hbm %s1959_s29, 8  ;;  %p1965_p8 = scmp.lt.s32.totalorder %s1959_s29, %s2389_s7 }
 0x6c0   : > { %p1961_p0 = scmp.ne.s32.totalorder %s1959_s29, %s1960_s9  ;;  %p1966_p1 = scmp.lt.s32.totalorder %s1964_s4, %s1960_s9 }
 0x6c2   : > { %p1962_p2 = pnand %p1961_p0, %p2193_p4  ;;  %p1967_p3 = por %p1966_p1, %p1965_p8 }
 0x6c4   : > { %p1963_p5 = pneg %p1962_p2 }
 0x6c6   : > { %p1968_p9 = pnand %p1967_p3, %p1963_p5 }
 0x72a   : > { %v1339_v55 = vpop.xlane.xlu2 %1338 }
 0x72b   : > { %v1340_v56 = vmul.f32 %v1339_v55, %v1333_v50 }
 0x72d   : > { %v1341_v57 = vadd.f32 1e-06, %v1340_v56 }
 0x72f   : > { %1764 = vrsqrt.f32 %v1341_v57  ;;  %vm1348_vm8 = vweird.f32 %v1341_v57 }
 0x735   : > { %v1765_v58 = vpop.eup %1764 }
 0x736   : > { %v1343_v59 = vmul.f32 %v1765_v58, %v1341_v57  ;;  %vm1349_vm7 = vweird.f32 %v1765_v58 }
 0x737   : > { %vm1350_vm9 = vmor %vm1348_vm8, %vm1349_vm7 }
 0x738   : > { %v1344_v60 = vmul.f32 %v1765_v58, %v1343_v59 }
 0x73a   : > { %v1345_v61 = vmul.f32 0.5, %v1344_v60 }
 0x73c   : > { %v1346_v62 = vsub.f32 1.5, %v1345_v61 }
 0x73e   : > { %v1347_v63 = vmul.f32 %v1765_v58, %v1346_v62 }
 0x740   : > { %v1351_v1 = vsel %vm1350_vm9, %v1765_v58, %v1347_v63 }
 0x741   : > { %v1352_v2 = vmul.f32 %v1351_v1, %v1335_v53 }
 0x743   : > { %v1357_v4 = vmul.f32 %v1744_v0, %v1352_v2 }
 0x745   : > { %v1362_v5 = vadd.f32 %v1745_v3, %v1357_v4 }
 0x747   : > { %1363 = vst.msk [vmem:[%s433_s30] sm:$0xff] %vm450_vm0, %v1362_v5 }
 0x748   : > { %1971 = shalt.err (!%p1968_p9)
}
 0x749   : > { %1628 = dma.vmem_to_hbm [thread:$0]  (%p2193_p4), %s1384_s2, 128, %s1386_s3, %s1365_s27  }
 0x74a PF: > { %s2414_s21 = sld [smem:[#allocation22_spill]]  ;;  %p1650_p10 = pnand %p1576_p6, %p2201_p7 }
 0x74c   : > { %p1651_p11 = pneg %p1650_p10 }
 0x750   : > { %s1415_s25 = sand.u32 1, %s2414_s21  }
 0x751   : > { %s1416_s26 = scalar_lea.sflag [#allocation6], %s1415_s25 }
 0x752   : > { %2013 = dma.done.wait (%p1651_p11), %s1416_s26, 128  }
 0x753   : > { %2015 = vsyncadd (%p1651_p11), %s1416_s26, 4294967168  ;;  %s1426_s12 = scalar_lea.sflag [#allocation15], %s1415_s25 }
 0x754   : > { %2017 = dma.done.wait (%p1651_p11), %s1426_s12, 256  }
 0x755   : > { %2019 = vsyncadd (%p1651_p11), %s1426_s12, 4294967040  ;;  %s32_s10 = sadd.s32 1, %s2042_s10   ;;  %s2416_s23 = sld [smem:[#allocation23_spill]] }
 0x756   : > { %p29_p12 = scmp.ge.s32.totalorder %s32_s10, 4   ;;  %s2417_s29 = sld [smem:[#allocation26_spill]] }
 0x757   : > { %s2418_s30 = sld [smem:[#allocation24_spill]]  ;;  %s2420_s27 = smov %s2026_s28 }
 0x758   : > { %s2419_s9 = sld [smem:[#allocation25_spill]]  ;;  %31 = sbr.rel (!%p29_p12) target bundleno = 15 (0xf), region = 139 }
 0x75b   : > { %s2421_s28 = smov %s2416_s23 }
 0x75d   :  { %1432 = vsyncpa [#allocation5], 1 }
 0x75e   :  { %1434 = vsyncpa [#allocation5 + $0x1], 1 }
 0x75f   :  { %1435 = vsyncpa [#allocation8], 1 }
 0x760   :  { %1437 = vsyncpa [#allocation8 + $0x1], 1 }
 0x761   :  { %1438 = vsyncpa [#allocation11], 1 }
 0x762   :  { %1439 = vsyncpa [#allocation6], 1 }
 0x763   :  { %1441 = vsyncpa [#allocation6 + $0x1], 1 }
 0x764   :  { %1442 = vsyncpa [#allocation15], 1 }
 0x765   :  { %1444 = vsyncpa [#allocation15 + $0x1], 1 }

</bundles_post_ra>
